<compile_context>
chip_gen: v7x
topology: tpu7x:2x2x1
jax: 0.10.0
libtpu: 0.0.40
codegen_flags: <defaults>
</compile_context>

<pallas_src>
import functools

import jax
import jax.numpy as jnp
import numpy as np
from jax.experimental import pallas as pl
from jax.experimental.pallas import tpu as pltpu


def _repvgg_deploy_kernel(k, d, s, groups, x_ref, w_ref, b_ref, o_ref):
    """One grid step: B images, valid conv(k, dilation d, stride s) + bias + ReLU."""
    B, H, W, Cin = x_ref.shape
    _, Ho, Wo, Cout = o_ref.shape
    Cin_g = Cin // groups
    Cout_g = Cout // groups
    rows = B * Ho * Wo

    x = x_ref[...]            # (B, H, W, Cin)  bf16, loaded once per step
    bias = b_ref[...]         # (1, Cout)       f32, loaded once per step

    group_outs = []
    for gi in range(groups):
        xg = x[..., gi * Cin_g:(gi + 1) * Cin_g]            # (B, H, W, Cin_g)
        # Bias-initialized f32 accumulator (folds the bias add into init).
        acc = jnp.broadcast_to(
            bias[:, gi * Cout_g:(gi + 1) * Cout_g], (rows, Cout_g)
        ).astype(jnp.float32)
        # Conv as k*k shifted 1x1 convs: no lane-concat, pure MXU + f32 adds.
        for ki in range(k):
            for kj in range(k):
                h0 = ki * d
                w0 = kj * d
                tap = xg[:,
                         h0:h0 + s * (Ho - 1) + 1:s,
                         w0:w0 + s * (Wo - 1) + 1:s,
                         :].reshape(rows, Cin_g)            # (rows, Cin_g)
                acc = acc + jnp.dot(tap, w_ref[gi, ki * k + kj, :, :],
                                    preferred_element_type=jnp.float32)
        group_outs.append(acc)
    y = group_outs[0] if groups == 1 else jnp.concatenate(group_outs, axis=-1)
    y = jnp.maximum(y, 0.0)                                 # ReLU (SE == Identity)
    o_ref[...] = y.reshape(B, Ho, Wo, Cout).astype(o_ref.dtype)


def _choose_images_per_step(N, H, W, Cin, Ho, Wo, Cout, vmem_budget=10 << 20):
    """Largest divisor of N that fits the VMEM budget while keeping >=2 grid steps."""
    per_image = (2 * (H * W * Cin * 2)            # double-buffered bf16 input tile
                 + 2 * (Ho * Wo * Cout * 4)       # double-buffered f32 output tile
                 + Ho * Wo * (Cin * 2 + Cout * 4))  # in-flight tap + f32 accumulator
    divisors = [b for b in range(1, N + 1) if N % b == 0]
    fits = [b for b in divisors if b * per_image <= vmem_budget] or [1]
    multi = [b for b in fits if N // b >= 2]   # keep parallel grid >= 2 (v7x: 2 TCs)
    return max(multi) if multi else max(fits)


def repvgg_forward(x_nchw, params, *, kernel_size, stride=1, dilation=1, groups=1,
                   images_per_step=None):
    """RepVGGBlock(deploy=True) forward.  Input / output are NCHW (PyTorch layout)."""
    N, Cin, H, W = x_nchw.shape
    k, d, s = kernel_size, dilation, stride
    w_t = params["weight"]                     # (Cout, Cin//g, k, k)  PyTorch layout
    bias = params["bias"]                      # (Cout,)
    Cout = w_t.shape[0]
    Cin_g = Cin // groups
    Cout_g = Cout // groups
    Ho = (H - d * (k - 1) - 1) // s + 1
    Wo = (W - d * (k - 1) - 1) // s + 1

    # NCHW -> NHWC; bf16 activations into the kernel (f32 accumulation inside).
    x = jnp.transpose(x_nchw, (0, 2, 3, 1)).astype(jnp.bfloat16)

    # Weight -> per-tap matmul layout (g, k*k, Cin_g, Cout_g): each (ki, kj) tap's
    # RHS is a static contiguous (Cin_g, Cout_g) VMEM slice.
    w_taps = jnp.transpose(
        w_t.reshape(groups, Cout_g, Cin_g, k, k), (0, 3, 4, 2, 1)
    ).reshape(groups, k * k, Cin_g, Cout_g).astype(jnp.bfloat16)
    b2 = bias.reshape(1, Cout).astype(jnp.float32)

    B = (images_per_step if images_per_step is not None
         else _choose_images_per_step(N, H, W, Cin, Ho, Wo, Cout))
    assert N % B == 0, "images_per_step must divide the batch"

    kernel = functools.partial(_repvgg_deploy_kernel, k, d, s, groups)
    out_nhwc = pl.pallas_call(
        kernel,
        out_shape=jax.ShapeDtypeStruct((N, Ho, Wo, Cout), jnp.float32),
        grid_spec=pltpu.PrefetchScalarGridSpec(
            num_scalar_prefetch=0,
            grid=(N // B,),
            in_specs=[
                pl.BlockSpec((B, H, W, Cin), lambda n: (n, 0, 0, 0)),
                pl.BlockSpec((groups, k * k, Cin_g, Cout_g),
                             lambda n: (0, 0, 0, 0)),
                pl.BlockSpec((1, Cout), lambda n: (0, 0)),
            ],
            out_specs=pl.BlockSpec((B, Ho, Wo, Cout), lambda n: (n, 0, 0, 0)),
        ),
        compiler_params=pltpu.CompilerParams(
            dimension_semantics=("parallel",),
            vmem_limit_bytes=32 * 1024 * 1024,
        ),
    )(x, w_taps, b2)
    return jnp.transpose(out_nhwc, (0, 3, 1, 2))              # -> NCHW


def init_params(key, in_channels, out_channels, kernel_size, groups=1):
    """Deterministic synthetic parameters in PyTorch shapes (OIHW weight, bias)."""
    kw, kb = jax.random.split(key)
    w = 0.1 * jax.random.normal(
        kw, (out_channels, in_channels // groups, kernel_size, kernel_size),
        jnp.float32)
    b = 0.1 * jax.random.normal(kb, (out_channels,), jnp.float32)
    return dict(weight=w, bias=b)


def repvgg_reference(x_nchw, params, *, kernel_size, stride=1, dilation=1, groups=1):
    """Pure-JAX (XLA) f32 reference of RepVGGBlock(deploy=True).forward."""
    y = jax.lax.conv_general_dilated(
        x_nchw.astype(jnp.float32), params["weight"].astype(jnp.float32),
        window_strides=(stride, stride), padding="VALID",
        rhs_dilation=(dilation, dilation),
        dimension_numbers=("NCHW", "OIHW", "NCHW"),
        feature_group_count=groups)
    y = y + params["bias"].reshape(1, -1, 1, 1)
    return jnp.maximum(y, 0.0)                                # ReLU (SE == Identity)


if __name__ == "__main__":
    # Small deterministic config.  H=W=18 with k=3, pad=0 -> 16x16 output, which
    # keeps the in-kernel (B, Ho, Wo, C) <-> (B*Ho*Wo, C) reshapes 8-sublane aligned.
    N, Cin, H, W = 2, 4, 18, 18
    Cout, k, s, d, g = 8, 3, 1, 1, 1

    key = jax.random.PRNGKey(0)
    kx, kp = jax.random.split(key)
    x = jax.random.normal(kx, (N, Cin, H, W), jnp.float32)
    params = init_params(kp, Cin, Cout, k, groups=g)

    out = repvgg_forward(x, params, kernel_size=k, stride=s, dilation=d, groups=g)
    out = jax.block_until_ready(out)

    ref = repvgg_reference(x, params, kernel_size=k, stride=s, dilation=d, groups=g)
    # bf16 MXU operands (f32 accumulation) => loosened tolerance vs f32 reference.
    np.testing.assert_allclose(np.asarray(out), np.asarray(ref), atol=3e-2, rtol=3e-2)
    print("KERNEL_OK")
</pallas_src>

<mosaic_0001>
module attributes {stable_mosaic.version = 11 : i64} {
  func.func @_repvgg_deploy_kernel(%arg0: i32, %arg1: memref<1x18x18x4xbf16, #tpu.memory_space<vmem>>, %arg2: memref<1x9x4x8xbf16, #tpu.memory_space<vmem>>, %arg3: memref<1x8xf32, #tpu.memory_space<vmem>>, %arg4: memref<1x16x16x8xf32, #tpu.memory_space<vmem>>) attributes {dimension_semantics = [#tpu.dimension_semantics<parallel>], iteration_bounds = array<i64: 2>, scalar_prefetch = 0 : i64, scratch_operands = 0 : i64, tpu.core_type = #tpu.core_type<tc>, window_params = [{transform_indices = @transform_0, window_bounds = array<i64: 1, 18, 18, 4>}, {pipeline_mode = #tpu.pipeline_mode<synchronous>, transform_indices = @transform_1, window_bounds = array<i64: 1, 9, 4, 8>}, {pipeline_mode = #tpu.pipeline_mode<synchronous>, transform_indices = @transform_2, window_bounds = array<i64: 1, 8>}, {transform_indices = @transform_3, window_bounds = array<i64: 1, 16, 16, 8>}]} {
    %c0 = arith.constant 0 : index
    %c0_0 = arith.constant 0 : index
    %c0_1 = arith.constant 0 : index
    %c0_2 = arith.constant 0 : index
    %0 = vector.load %arg1[%c0, %c0_0, %c0_1, %c0_2] : memref<1x18x18x4xbf16, #tpu.memory_space<vmem>>, vector<1x18x18x4xbf16>
    %c0_3 = arith.constant 0 : index
    %c0_4 = arith.constant 0 : index
    %1 = vector.load %arg3[%c0_3, %c0_4] : memref<1x8xf32, #tpu.memory_space<vmem>>, vector<1x8xf32>
    %2 = vector.shape_cast %1 : vector<1x8xf32> to vector<1x8xf32>
    %3 = vector.broadcast %2 : vector<1x8xf32> to vector<256x8xf32>
    %4 = vector.extract_strided_slice %0 {offsets = [0, 0, 0, 0], sizes = [1, 16, 16, 4], strides = [1, 1, 1, 1]} : vector<1x18x18x4xbf16> to vector<1x16x16x4xbf16>
    %5 = vector.shape_cast %4 : vector<1x16x16x4xbf16> to vector<256x4xbf16>
    %c0_5 = arith.constant 0 : index
    %c0_6 = arith.constant 0 : index
    %c0_7 = arith.constant 0 : index
    %c0_8 = arith.constant 0 : index
    %6 = vector.load %arg2[%c0_5, %c0_6, %c0_7, %c0_8] : memref<1x9x4x8xbf16, #tpu.memory_space<vmem>>, vector<1x1x4x8xbf16>
    %7 = vector.shape_cast %6 : vector<1x1x4x8xbf16> to vector<4x8xbf16>
    %cst = arith.constant dense<0.000000e+00> : vector<256x8xf32>
    %8 = tpu.matmul %5, %7, %cst {dimension_numbers = #tpu.dot_dimension_numbers<[1], [0], [0], [1], [0, 0, 1, 1], [], []>} : vector<256x4xbf16>, vector<4x8xbf16>, vector<256x8xf32> -> vector<256x8xf32>
    %9 = arith.addf %3, %8 : vector<256x8xf32>
    %10 = vector.extract_strided_slice %0 {offsets = [0, 0, 1, 0], sizes = [1, 16, 16, 4], strides = [1, 1, 1, 1]} : vector<1x18x18x4xbf16> to vector<1x16x16x4xbf16>
    %11 = vector.shape_cast %10 : vector<1x16x16x4xbf16> to vector<256x4xbf16>
    %c0_9 = arith.constant 0 : index
    %c1 = arith.constant 1 : index
    %c0_10 = arith.constant 0 : index
    %c0_11 = arith.constant 0 : index
    %12 = vector.load %arg2[%c0_9, %c1, %c0_10, %c0_11] : memref<1x9x4x8xbf16, #tpu.memory_space<vmem>>, vector<1x1x4x8xbf16>
    %13 = vector.shape_cast %12 : vector<1x1x4x8xbf16> to vector<4x8xbf16>
    %cst_12 = arith.constant dense<0.000000e+00> : vector<256x8xf32>
    %14 = tpu.matmul %11, %13, %cst_12 {dimension_numbers = #tpu.dot_dimension_numbers<[1], [0], [0], [1], [0, 0, 1, 1], [], []>} : vector<256x4xbf16>, vector<4x8xbf16>, vector<256x8xf32> -> vector<256x8xf32>
    %15 = arith.addf %9, %14 : vector<256x8xf32>
    %16 = vector.extract_strided_slice %0 {offsets = [0, 0, 2, 0], sizes = [1, 16, 16, 4], strides = [1, 1, 1, 1]} : vector<1x18x18x4xbf16> to vector<1x16x16x4xbf16>
    %17 = vector.shape_cast %16 : vector<1x16x16x4xbf16> to vector<256x4xbf16>
    %c0_13 = arith.constant 0 : index
    %c2 = arith.constant 2 : index
    %c0_14 = arith.constant 0 : index
    %c0_15 = arith.constant 0 : index
    %18 = vector.load %arg2[%c0_13, %c2, %c0_14, %c0_15] : memref<1x9x4x8xbf16, #tpu.memory_space<vmem>>, vector<1x1x4x8xbf16>
    %19 = vector.shape_cast %18 : vector<1x1x4x8xbf16> to vector<4x8xbf16>
    %cst_16 = arith.constant dense<0.000000e+00> : vector<256x8xf32>
    %20 = tpu.matmul %17, %19, %cst_16 {dimension_numbers = #tpu.dot_dimension_numbers<[1], [0], [0], [1], [0, 0, 1, 1], [], []>} : vector<256x4xbf16>, vector<4x8xbf16>, vector<256x8xf32> -> vector<256x8xf32>
    %21 = arith.addf %15, %20 : vector<256x8xf32>
    %22 = vector.extract_strided_slice %0 {offsets = [0, 1, 0, 0], sizes = [1, 16, 16, 4], strides = [1, 1, 1, 1]} : vector<1x18x18x4xbf16> to vector<1x16x16x4xbf16>
    %23 = vector.shape_cast %22 : vector<1x16x16x4xbf16> to vector<256x4xbf16>
    %c0_17 = arith.constant 0 : index
    %c3 = arith.constant 3 : index
    %c0_18 = arith.constant 0 : index
    %c0_19 = arith.constant 0 : index
    %24 = vector.load %arg2[%c0_17, %c3, %c0_18, %c0_19] : memref<1x9x4x8xbf16, #tpu.memory_space<vmem>>, vector<1x1x4x8xbf16>
    %25 = vector.shape_cast %24 : vector<1x1x4x8xbf16> to vector<4x8xbf16>
    %cst_20 = arith.constant dense<0.000000e+00> : vector<256x8xf32>
    %26 = tpu.matmul %23, %25, %cst_20 {dimension_numbers = #tpu.dot_dimension_numbers<[1], [0], [0], [1], [0, 0, 1, 1], [], []>} : vector<256x4xbf16>, vector<4x8xbf16>, vector<256x8xf32> -> vector<256x8xf32>
    %27 = arith.addf %21, %26 : vector<256x8xf32>
    %28 = vector.extract_strided_slice %0 {offsets = [0, 1, 1, 0], sizes = [1, 16, 16, 4], strides = [1, 1, 1, 1]} : vector<1x18x18x4xbf16> to vector<1x16x16x4xbf16>
    %29 = vector.shape_cast %28 : vector<1x16x16x4xbf16> to vector<256x4xbf16>
    %c0_21 = arith.constant 0 : index
    %c4 = arith.constant 4 : index
    %c0_22 = arith.constant 0 : index
    %c0_23 = arith.constant 0 : index
    %30 = vector.load %arg2[%c0_21, %c4, %c0_22, %c0_23] : memref<1x9x4x8xbf16, #tpu.memory_space<vmem>>, vector<1x1x4x8xbf16>
    %31 = vector.shape_cast %30 : vector<1x1x4x8xbf16> to vector<4x8xbf16>
    %cst_24 = arith.constant dense<0.000000e+00> : vector<256x8xf32>
    %32 = tpu.matmul %29, %31, %cst_24 {dimension_numbers = #tpu.dot_dimension_numbers<[1], [0], [0], [1], [0, 0, 1, 1], [], []>} : vector<256x4xbf16>, vector<4x8xbf16>, vector<256x8xf32> -> vector<256x8xf32>
    %33 = arith.addf %27, %32 : vector<256x8xf32>
    %34 = vector.extract_strided_slice %0 {offsets = [0, 1, 2, 0], sizes = [1, 16, 16, 4], strides = [1, 1, 1, 1]} : vector<1x18x18x4xbf16> to vector<1x16x16x4xbf16>
    %35 = vector.shape_cast %34 : vector<1x16x16x4xbf16> to vector<256x4xbf16>
    %c0_25 = arith.constant 0 : index
    %c5 = arith.constant 5 : index
    %c0_26 = arith.constant 0 : index
    %c0_27 = arith.constant 0 : index
    %36 = vector.load %arg2[%c0_25, %c5, %c0_26, %c0_27] : memref<1x9x4x8xbf16, #tpu.memory_space<vmem>>, vector<1x1x4x8xbf16>
    %37 = vector.shape_cast %36 : vector<1x1x4x8xbf16> to vector<4x8xbf16>
    %cst_28 = arith.constant dense<0.000000e+00> : vector<256x8xf32>
    %38 = tpu.matmul %35, %37, %cst_28 {dimension_numbers = #tpu.dot_dimension_numbers<[1], [0], [0], [1], [0, 0, 1, 1], [], []>} : vector<256x4xbf16>, vector<4x8xbf16>, vector<256x8xf32> -> vector<256x8xf32>
    %39 = arith.addf %33, %38 : vector<256x8xf32>
    %40 = vector.extract_strided_slice %0 {offsets = [0, 2, 0, 0], sizes = [1, 16, 16, 4], strides = [1, 1, 1, 1]} : vector<1x18x18x4xbf16> to vector<1x16x16x4xbf16>
    %41 = vector.shape_cast %40 : vector<1x16x16x4xbf16> to vector<256x4xbf16>
    %c0_29 = arith.constant 0 : index
    %c6 = arith.constant 6 : index
    %c0_30 = arith.constant 0 : index
    %c0_31 = arith.constant 0 : index
    %42 = vector.load %arg2[%c0_29, %c6, %c0_30, %c0_31] : memref<1x9x4x8xbf16, #tpu.memory_space<vmem>>, vector<1x1x4x8xbf16>
    %43 = vector.shape_cast %42 : vector<1x1x4x8xbf16> to vector<4x8xbf16>
    %cst_32 = arith.constant dense<0.000000e+00> : vector<256x8xf32>
    %44 = tpu.matmul %41, %43, %cst_32 {dimension_numbers = #tpu.dot_dimension_numbers<[1], [0], [0], [1], [0, 0, 1, 1], [], []>} : vector<256x4xbf16>, vector<4x8xbf16>, vector<256x8xf32> -> vector<256x8xf32>
    %45 = arith.addf %39, %44 : vector<256x8xf32>
    %46 = vector.extract_strided_slice %0 {offsets = [0, 2, 1, 0], sizes = [1, 16, 16, 4], strides = [1, 1, 1, 1]} : vector<1x18x18x4xbf16> to vector<1x16x16x4xbf16>
    %47 = vector.shape_cast %46 : vector<1x16x16x4xbf16> to vector<256x4xbf16>
    %c0_33 = arith.constant 0 : index
    %c7 = arith.constant 7 : index
    %c0_34 = arith.constant 0 : index
    %c0_35 = arith.constant 0 : index
    %48 = vector.load %arg2[%c0_33, %c7, %c0_34, %c0_35] : memref<1x9x4x8xbf16, #tpu.memory_space<vmem>>, vector<1x1x4x8xbf16>
    %49 = vector.shape_cast %48 : vector<1x1x4x8xbf16> to vector<4x8xbf16>
    %cst_36 = arith.constant dense<0.000000e+00> : vector<256x8xf32>
    %50 = tpu.matmul %47, %49, %cst_36 {dimension_numbers = #tpu.dot_dimension_numbers<[1], [0], [0], [1], [0, 0, 1, 1], [], []>} : vector<256x4xbf16>, vector<4x8xbf16>, vector<256x8xf32> -> vector<256x8xf32>
    %51 = arith.addf %45, %50 : vector<256x8xf32>
    %52 = vector.extract_strided_slice %0 {offsets = [0, 2, 2, 0], sizes = [1, 16, 16, 4], strides = [1, 1, 1, 1]} : vector<1x18x18x4xbf16> to vector<1x16x16x4xbf16>
    %53 = vector.shape_cast %52 : vector<1x16x16x4xbf16> to vector<256x4xbf16>
    %c0_37 = arith.constant 0 : index
    %c8 = arith.constant 8 : index
    %c0_38 = arith.constant 0 : index
    %c0_39 = arith.constant 0 : index
    %54 = vector.load %arg2[%c0_37, %c8, %c0_38, %c0_39] : memref<1x9x4x8xbf16, #tpu.memory_space<vmem>>, vector<1x1x4x8xbf16>
    %55 = vector.shape_cast %54 : vector<1x1x4x8xbf16> to vector<4x8xbf16>
    %cst_40 = arith.constant dense<0.000000e+00> : vector<256x8xf32>
    %56 = tpu.matmul %53, %55, %cst_40 {dimension_numbers = #tpu.dot_dimension_numbers<[1], [0], [0], [1], [0, 0, 1, 1], [], []>} : vector<256x4xbf16>, vector<4x8xbf16>, vector<256x8xf32> -> vector<256x8xf32>
    %57 = arith.addf %51, %56 : vector<256x8xf32>
    %cst_41 = arith.constant 0.000000e+00 : f32
    %58 = vector.broadcast %cst_41 : f32 to vector<256x8xf32>
    %59 = arith.maximumf %57, %58 : vector<256x8xf32>
    %60 = vector.shape_cast %59 : vector<256x8xf32> to vector<1x16x16x8xf32>
    %c0_42 = arith.constant 0 : index
    %c0_43 = arith.constant 0 : index
    %c0_44 = arith.constant 0 : index
    %c0_45 = arith.constant 0 : index
    %61 = vector.load %arg4[%c0_42, %c0_43, %c0_44, %c0_45] : memref<1x16x16x8xf32, #tpu.memory_space<vmem>>, vector<1x16x16x8xf32>
    tpu.vector_store %arg4[%c0_42, %c0_43, %c0_44, %c0_45], %60 {strides = array<i32>} : memref<1x16x16x8xf32, #tpu.memory_space<vmem>>, vector<1x16x16x8xf32>,
    return
  }
  func.func @transform_0(%arg0: i32) -> (i32, i32, i32, i32) {
    %c0_i32 = arith.constant 0 : i32
    %c0_i32_0 = arith.constant 0 : i32
    %c0_i32_1 = arith.constant 0 : i32
    %c0_i32_2 = arith.constant 0 : i32
    return %arg0, %c0_i32, %c0_i32_0, %c0_i32_1 : i32, i32, i32, i32
  }
  func.func @transform_1(%arg0: i32) -> (i32, i32, i32, i32) {
    %c0_i32 = arith.constant 0 : i32
    %c0_i32_0 = arith.constant 0 : i32
    %c0_i32_1 = arith.constant 0 : i32
    %c0_i32_2 = arith.constant 0 : i32
    %c0_i32_3 = arith.constant 0 : i32
    return %c0_i32, %c0_i32_0, %c0_i32_1, %c0_i32_2 : i32, i32, i32, i32
  }
  func.func @transform_2(%arg0: i32) -> (i32, i32) {
    %c0_i32 = arith.constant 0 : i32
    %c0_i32_0 = arith.constant 0 : i32
    %c0_i32_1 = arith.constant 0 : i32
    return %c0_i32, %c0_i32_0 : i32, i32
  }
  func.func @transform_3(%arg0: i32) -> (i32, i32, i32, i32) {
    %c0_i32 = arith.constant 0 : i32
    %c0_i32_0 = arith.constant 0 : i32
    %c0_i32_1 = arith.constant 0 : i32
    %c0_i32_2 = arith.constant 0 : i32
    return %arg0, %c0_i32, %c0_i32_0, %c0_i32_1 : i32, i32, i32, i32
  }
}

</mosaic_0001>

<bundles_post_ra>
// kernel: tpu_custom_call.1
= control target key start
LH: loop header
LB: loop body
LE: loop exit
PB: predicated region body
PF: predicated region fallthrough
CT: control target
= control target key end

     0   :  { %s4129_s12 = smov 0   ;;  %s5299_s0 = inlined_call_operand.vmem [shape: bf16[2,18,18,4], index: 0, kind: input, shape index: {}]   ;;  %s5300_s1 = inlined_call_operand.vmem [shape: bf16[1,9,4,8], index: 1, kind: input, shape index: {}]   ;;  %s5301_s2 = inlined_call_operand.vmem [shape: f32[1,8], index: 2, kind: input, shape index: {}]   ;;  %s5302_s3 = inlined_call_operand.vmem [shape: f32[2,16,16,8], index: 3, kind: output, shape index: {}]  }
   0x1 LB: > { %s3078_s13 = sadd.s32 4294967295, %s4107_s12   ;;  %p3082_p0 = scmp.ge.s32.totalorder %s4107_s12, 1  ;;  %s4107_s12 = sphi %s4129_s12, %s13_s12  }
   0x2   : > { %p137_p1 = scmp.lt.s32.totalorder %s4107_s12, 3 }
   0x4   : > { %p138_p2 = pnand %p3082_p0, %p137_p1 }
   0x6   : > { %141 = sbr.rel (%p138_p2) target bundleno = 541 (0x21d), region = 32 }
   0xd   : > { %v233_v0 = vld [vmem:[%s5300_s1] sm:$0x3]  ;;  %vm363_vm0 = vcmask 1041408   ;;  %p161_p3 = scmp.lt.s32.totalorder %s3078_s13, 1  ;;  %v3219_v2 = vld [vmem:[%s5300_s1 + $0x8] sm:$0x3] }
   0xe   : > { %4063 = vmatprep.subr.msk.bf16.mxu1 %vm363_vm0, %v233_v0  ;;  %v365_v1 = vsel %vm363_vm0, %v233_v0, 0  ;;  %v3119_v3 = vld [vmem:[%s5300_s1 + $0x2] sm:$0x3]  ;;  %4067 = vmatprep.subr.msk.bf16.mxu0 %vm363_vm0, %v3219_v2  ;;  %v4152_v4 = vsel %vm363_vm0, %v3219_v2, 0  ;;  %v3238_v5 = vld [vmem:[%s5300_s1 + $0xa] sm:$0x3] }
   0xf   : > { %3468 = vmatpush3.bf16.msra.mxu1 %v365_v1  ;;  %s5431_s13 = smov (!%p161_p3, %s3078_s13), 1  ;;  %5349 = vst [vmem:[#allocation2_spill] sm:$0xff] %v4152_v4  ;;  %3604 = vmatpush3.bf16.msra.mxu0 %v4152_v4  ;;  %vm314_vm1 = vcmask 31744   ;;  %v1046_v13 = vsel %vm363_vm0, %v3119_v3, 0  ;;  %v4195_v15 = vld [vmem:[%s5300_s1 + $0x4] sm:$0x3] }
  0x10   : > { %4064 = vmatprep.subr.msk.bf16.mxu1 %vm363_vm0, %v3119_v3  ;;  %s4073_s22 = smul.u32 216, %s5431_s13  ;;  %4069 = vmatprep.subr.msk.bf16.mxu0 %vm363_vm0, %v3238_v5  ;;  %vm560_vm2 = vsmask.f32 3328  ;;  %vm561_vm3 = vsmask.f32 7440  ;;  %v4217_v22 = vsel %vm363_vm0, %v3238_v5, 0 }
  0x11   : > { %vm4257_vm4 = vmor %vm560_vm2, %vm561_vm3  ;;  %vm1257_vm5 = vcmask 1042432   ;;  %vm1258_vm6 = vcmask 1046532   ;;  %s3313_s15 = sshll.u32 %s5431_s13, 8  ;;  %vm2990_vm8 = vcmask 64512  }
  0x12   : > { %s4164_s25 = scalar_lea.vmem %s5299_s0, %s4073_s22  ;;  %vm4468_vm7 = vmor %vm1257_vm5, %vm1258_vm6  ;;  %s5198_s18 = scalar_lea.vmem %s5302_s3, %s3313_s15 }
  0x13   : > { %v4167_v6 = vld [vmem:[%s4164_s25] sm:$0xf]  ;;  %v4170_v7 = vld [vmem:[%s4164_s25 + $0x4] sm:$0xf]  ;;  %v4173_v8 = vld [vmem:[%s4164_s25 + $0xc] sm:$0xf] }
  0x14   : > { %v3087_v9 = vcombine.low %v4167_v6, %v4170_v7  ;;  %v4178_v10 = vld [vmem:[%s4164_s25 + $0x10] sm:$0xf]  ;;  %v4185_v12 = vld [vmem:[%s4164_s25 + $0x18] sm:$0xf]  ;;  %v4190_v14 = vld [vmem:[%s4164_s25 + $0x1c] sm:$0xf] }
  0x15   : > { %v4182_v11 = vcombine.low %v4173_v8, %v4178_v10  ;;  %v4201_v16 = vcombine.low %v4185_v12, %v4190_v14  ;;  %v612_v17 = vshrl.u32 %v4185_v12, 16  ;;  %v4205_v18 = vld [vmem:[%s4164_s25 + $0x24] sm:$0xf]  ;;  %v4208_v19 = vld [vmem:[%s4164_s25 + $0x28] sm:$0xf]  ;;  %v615_v20 = vshll.u32 %v4185_v12, 16 }
  0x16   : > { %3469 = vmatprep.mubr.msk.bf16.mxu1 %vm314_vm1, %v3087_v9  ;;  %v4214_v21 = vld [vmem:[%s4164_s25 + $0x14] sm:$0x1]  ;;  %v625_v25 = vshrl.u32 %v4190_v14, 16  ;;  %v588_v26 = vshrl.u32 %v4173_v8, 16  ;;  %v4227_v27 = vcombine.low %v4205_v18, %v4208_v19  ;;  %v591_v28 = vshll.u32 %v4173_v8, 16 }
  0x17   : > { %5350 = vst [vmem:[#allocation3_spill] sm:$0xff] %v4182_v11  ;;  %3470 = vmatmul.mubr.msk.bf16.vlgmr.msra.gmra.mrb[0].mxu1 %vm314_vm1, %v4182_v11  ;;  %5351 = vst [vmem:[#allocation4_spill] sm:$0xff] %v4201_v16  ;;  %v597_v29 = vshll.u32 %v4178_v10, 16  ;;  %v601_v30 = vshrl.u32 %v4178_v10, 16  ;;  %v4233_v31 = vld [vmem:[%s4164_s25 + $0x20] sm:$0x1] }
  0x18   : > { %3502 = vmatpush3.bf16.msra.mxu1 %v1046_v13  ;;  %3473 = vmatprep.mubr.msk.bf16.mxu1 %vm314_vm1, %v4201_v16  ;;  %5352 = vst [vmem:[#allocation5_spill] sm:$0xff] %v4227_v27  ;;  %v636_v32 = vshrl.u32 %v4205_v18, 16  ;;  %v590_v33 = vrot.slane %v588_v26, 4  ;;  %v607_v34 = vshll.u32 %v4214_v21, 16  ;;  %v614_v35 = vrot.slane %v612_v17, 4 }
  0x19   : > { %4065 = vmatprep.subr.msk.bf16.mxu1 %vm363_vm0, %v4195_v15  ;;  %v593_v36 = vrot.slane %v591_v28, 5  ;;  %v599_v37 = vrot.slane %v597_v29, 5  ;;  %v603_v38 = vrot.slane %v601_v30, 4  ;;  %v617_v39 = vrot.slane %v615_v20, 5  ;;  %v4238_v40 = vld [vmem:[%s4164_s25 + $0x30] sm:$0xf] }
  0x1a   : > { %v639_v41 = vshll.u32 %v4205_v18, 16  ;;  %v621_v42 = vshll.u32 %v4190_v14, 16  ;;  %v627_v43 = vrot.slane %v625_v25, 4  ;;  %v631_v44 = vshll.u32 %v4233_v31, 16  ;;  %v4244_v45 = vld [vmem:[%s4164_s25 + $0x34] sm:$0xf] }
  0x1b   : > { %v594_v46 = vor.u32 %v593_v36, %v590_v33  ;;  %v604_v47 = vor.u32 %v603_v38, %v599_v37  ;;  %v609_v48 = vrot.slane %v607_v34, 5  ;;  %v618_v49 = vor.u32 %v617_v39, %v614_v35  ;;  %v4249_v50 = vld [vmem:[%s4164_s25 + $0x3c] sm:$0xf]  ;;  %v4252_v51 = vld [vmem:[%s4164_s25 + $0x40] sm:$0xf] }
  0x1c   : > { %v649_v52 = vshrl.u32 %v4208_v19, 16  ;;  %v623_v54 = vrot.slane %v621_v42, 5  ;;  %v633_v55 = vrot.slane %v631_v44, 5  ;;  %v4263_v56 = vcombine.low %v4238_v40, %v4244_v45  ;;  %v4275_v1 = vld [vmem:[%s4164_s25 + $0x2c] sm:$0x1] }
  0x1d   : > { %v595_v57 = vrot.slane %v594_v46, 4  ;;  %v605_v58 = vrot.slane %v604_v47, 4  ;;  %v619_v59 = vrot.slane %v618_v49, 4  ;;  %v660_v60 = vshrl.u32 %v4238_v40, 16  ;;  %v4290_v33 = vld [vmem:[%s4164_s25 + $0x38] sm:$0x1] }
  0x1e   : > { %5355 = vst [vmem:[#allocation6_spill] sm:$0xff] %v4263_v56  ;;  %v628_v61 = vor.u32 %v627_v43, %v623_v54  ;;  %v663_v62 = vshll.u32 %v4238_v40, 16  ;;  %v673_v63 = vshrl.u32 %v4244_v45, 16  ;;  %v4272_v0 = vcombine.low %v4249_v50, %v4252_v51  ;;  %v4303_v38 = vld [vmem:[%s5300_s1 + $0xc] sm:$0x3] }
  0x1f   : > { %3474 = vmatmul.mubr.msk.bf16.gmra.mrb[4].mxu1 %vm314_vm1, %v4227_v27  ;;  %v600_v2 = vsel %vm4257_vm4, %v595_v57, %v599_v37  ;;  %v610_v3 = vsel %vm4257_vm4, %v605_v58, %v609_v48  ;;  %v624_v5 = vsel %vm4257_vm4, %v619_v59, %v623_v54  ;;  %v684_v9 = vshrl.u32 %v4249_v50, 16  ;;  %v4298_v37 = vld [vmem:[%s4164_s25 + $0x48] sm:$0xf]  ;;  %v4311_v44 = vld [vmem:[%s4164_s25 + $0x4c] sm:$0xf] }
  0x20   : > { %3477 = vmatprep.mubr.msk.bf16.mxu1 %vm314_vm1, %v4263_v56  ;;  %5356 = vst [vmem:[#allocation7_spill] sm:$0xff] %v4272_v0  ;;  %v4284_v13 = vcombine.low %v600_v2, %v610_v3  ;;  %v629_v17 = vrot.slane %v628_v61, 4  ;;  %v687_v20 = vshll.u32 %v4249_v50, 16  ;;  %v638_v25 = vrot.slane %v636_v32, 4  ;;  %v4314_v46 = vld [vmem:[%s4164_s25 + $0x54] sm:$0xf] }
  0x21   : > { %v641_v26 = vrot.slane %v639_v41, 5  ;;  %v645_v28 = vshll.u32 %v4208_v19, 16  ;;  %v651_v29 = vrot.slane %v649_v52, 4  ;;  %v655_v30 = vshll.u32 %v4275_v1, 16  ;;  %v4318_v54 = vld [vmem:[%s4164_s25 + $0x58] sm:$0xf] }
  0x22   : > { %3605 = vmatprep.mubr.msk.bf16.mxu0 %vm314_vm1, %v4284_v13  ;;  %v634_v34 = vsel %vm4257_vm4, %v629_v17, %v633_v55  ;;  %v662_v35 = vrot.slane %v660_v60, 4  ;;  %v665_v36 = vrot.slane %v663_v62, 5  ;;  %v669_v32 = vshll.u32 %v4244_v45, 16 }
  0x23   : > { %v4305_v39 = vcombine.low %v624_v5, %v634_v34  ;;  %v697_v41 = vshrl.u32 %v4252_v51, 16  ;;  %v642_v42 = vor.u32 %v641_v26, %v638_v25  ;;  %v647_v43 = vrot.slane %v645_v28, 5 }
  0x24   : > { %v666_v47 = vor.u32 %v665_v36, %v662_v35  ;;  %v671_v48 = vrot.slane %v669_v32, 5  ;;  %v675_v49 = vrot.slane %v673_v63, 4  ;;  %v679_v52 = vshll.u32 %v4290_v33, 16 }
  0x25   : > { %5357 = vst [vmem:[#allocation8_spill] sm:$0xff] %v4305_v39  ;;  %3606 = vmatmul.mubr.msk.bf16.vlgmr.msra.gmra.mrb[0].mxu0 %vm314_vm1, %v4305_v39  ;;  %v643_v55 = vrot.slane %v642_v42, 4  ;;  %v652_v57 = vor.u32 %v651_v29, %v647_v43  ;;  %v657_v58 = vrot.slane %v655_v30, 5  ;;  %v4324_v59 = vcombine.low %v4298_v37, %v4311_v44  ;;  %v4344_v29 = vld [vmem:[%s4164_s25 + $0x44] sm:$0x1] }
  0x26   : > { %3638 = vmatpush3.bf16.msra.mxu0 %v4217_v22  ;;  %v667_v60 = vrot.slane %v666_v47, 4  ;;  %v676_v61 = vor.u32 %v675_v49, %v671_v48  ;;  %v681_v62 = vrot.slane %v679_v52, 5  ;;  %v708_v63 = vshrl.u32 %v4298_v37, 16 }
  0x27   : > { %3478 = vmatmul.mubr.msk.bf16.gmra.mrb[8].mxu1 %vm314_vm1, %v4272_v0  ;;  %5358 = vst [vmem:[#allocation9_spill] sm:$0xff] %v4324_v59  ;;  %v648_v2 = vsel %vm4257_vm4, %v643_v55, %v647_v43  ;;  %v653_v3 = vrot.slane %v652_v57, 4  ;;  %v711_v5 = vshll.u32 %v4298_v37, 16  ;;  %v4335_v17 = vcombine.low %v4314_v46, %v4318_v54  ;;  %4070 = vmatprep.subr.msk.bf16.mxu0 %vm363_vm0, %v4303_v38  ;;  %v4363_v55 = vld [vmem:[%s4164_s25 + $0x60] sm:$0xf] }
  0x28   : > { %3481 = vmatprep.mubr.msk.bf16.mxu1 %vm314_vm1, %v4324_v59  ;;  %v672_v22 = vsel %vm4257_vm4, %v667_v60, %v671_v48  ;;  %v677_v25 = vrot.slane %v676_v61, 4  ;;  %v721_v26 = vshrl.u32 %v4311_v44, 16  ;;  %v732_v28 = vshrl.u32 %v4314_v46, 16  ;;  %v4355_v48 = vld [vmem:[%s4164_s25 + $0x50] sm:$0x1] }
  0x29   : > { %5359 = vst [vmem:[#allocation10_spill] sm:$0xff] %v4335_v17  ;;  %v658_v30 = vsel %vm4257_vm4, %v653_v3, %v657_v58  ;;  %v735_v34 = vshll.u32 %v4314_v46, 16  ;;  %v686_v35 = vrot.slane %v684_v9, 4  ;;  %v689_v36 = vrot.slane %v687_v20, 5  ;;  %v4366_v57 = vld [vmem:[%s4164_s25 + $0x64] sm:$0xf] }
  0x2a   : > { %v4349_v32 = vcombine.low %v648_v2, %v658_v30  ;;  %v682_v42 = vsel %vm4257_vm4, %v677_v25, %v681_v62  ;;  %v693_v43 = vshll.u32 %v4252_v51, 16  ;;  %v699_v47 = vrot.slane %v697_v41, 4  ;;  %v4372_v62 = vld [vmem:[%s4164_s25 + $0x6c] sm:$0xf]  ;;  %v4383_v25 = vld [vmem:[%s4164_s25 + $0x70] sm:$0xf] }
  0x2b   : > { %v4357_v49 = vcombine.low %v672_v22, %v682_v42  ;;  %v690_v52 = vor.u32 %v689_v36, %v686_v35  ;;  %v703_v9 = vshll.u32 %v4344_v29, 16  ;;  %v710_v20 = vrot.slane %v708_v63, 4  ;;  %v4436_v59 = vld [vmem:[%s4164_s25 + $0x88] sm:$0xf] }
  0x2c   : > { %3609 = vmatprep.mubr.msk.bf16.mxu0 %vm314_vm1, %v4349_v32  ;;  %v695_v41 = vrot.slane %v693_v43, 5  ;;  %v713_v58 = vrot.slane %v711_v5, 5  ;;  %v717_v60 = vshll.u32 %v4311_v44, 16  ;;  %v723_v61 = vrot.slane %v721_v26, 4 }
  0x2d   : > { %3610 = vmatmul.mubr.msk.bf16.gmra.mrb[4].mxu0 %vm314_vm1, %v4357_v49  ;;  %v745_v2 = vshrl.u32 %v4318_v54, 16  ;;  %v691_v63 = vrot.slane %v690_v52, 4  ;;  %v727_v3 = vshll.u32 %v4355_v48, 16  ;;  %v4380_v22 = vcombine.low %v4363_v55, %v4366_v57 }
  0x2e   : > { %v700_v5 = vor.u32 %v699_v47, %v695_v41  ;;  %v705_v30 = vrot.slane %v703_v9, 5  ;;  %v714_v26 = vor.u32 %v713_v58, %v710_v20  ;;  %v719_v35 = vrot.slane %v717_v60, 5  ;;  %v4396_v9 = vld [vmem:[%s4164_s25 + $0x5c] sm:$0x1] }
  0x2f   : > { %3482 = vmatmul.mubr.msk.bf16.gmra.mrb[12].mxu1 %vm314_vm1, %v4335_v17  ;;  %5360 = vst [vmem:[#allocation11_spill] sm:$0xff] %v4380_v22  ;;  %v696_v36 = vsel %vm4257_vm4, %v691_v63, %v695_v41  ;;  %v729_v42 = vrot.slane %v727_v3, 5  ;;  %v756_v43 = vshrl.u32 %v4363_v55, 16  ;;  %v759_v52 = vshll.u32 %v4363_v55, 16  ;;  %v4412_v17 = vld [vmem:[%s4164_s25 + $0x68] sm:$0x1] }
  0x30   : > { %3485 = vmatprep.mubr.msk.bf16.mxu1 %vm314_vm1, %v4380_v22  ;;  %v701_v24 = vrot.slane %v700_v5, 4  ;;  %v715_v23 = vrot.slane %v714_v26, 4  ;;  %v724_v4 = vor.u32 %v723_v61, %v719_v35  ;;  %v4393_v47 = vcombine.low %v4372_v62, %v4383_v25 }
  0x31   : > { %v573_v20 = vshll.u32 %v4170_v7, 16  ;;  %v577_v41 = vshrl.u32 %v4170_v7, 16  ;;  %v769_v58 = vshrl.u32 %v4366_v57, 16  ;;  %v734_v60 = vrot.slane %v732_v28, 4 }
  0x32   : > { %5361 = vst [vmem:[#allocation12_spill] sm:$0xff] %v4393_v47  ;;  %v706_v63 = vsel %vm4257_vm4, %v701_v24, %v705_v30  ;;  %v720_v61 = vsel %vm4257_vm4, %v715_v23, %v719_v35  ;;  %v725_v3 = vrot.slane %v724_v4, 4  ;;  %v737_v5 = vrot.slane %v735_v34, 5  ;;  %v4417_v30 = vld [vmem:[%s4164_s25 + $0x78] sm:$0xf] }
  0x33   : > { %v4405_v26 = vcombine.low %v696_v36, %v706_v63  ;;  %v741_v11 = vshll.u32 %v4318_v54, 16  ;;  %v747_v22 = vrot.slane %v745_v2, 4  ;;  %v751_v28 = vshll.u32 %v4396_v9, 16  ;;  %v4420_v35 = vld [vmem:[%s4164_s25 + $0x7c] sm:$0xf] }
  0x34   : > { %v730_v24 = vsel %vm4257_vm4, %v725_v3, %v729_v42  ;;  %v738_v23 = vor.u32 %v737_v5, %v734_v60  ;;  %v758_v4 = vrot.slane %v756_v43, 4  ;;  %v761_v34 = vrot.slane %v759_v52, 5  ;;  %v4432_v3 = vld [vmem:[%s4164_s25 + $0x84] sm:$0xf] }
  0x35   : > { %5362 = vst [vmem:[#allocation13_spill] sm:$0xff] %v4405_v26  ;;  %v5363_v36 = vshrl.u32 %v4167_v6, 16  ;;  %3613 = vmatprep.mubr.msk.bf16.mxu0 %vm314_vm1, %v4405_v26  ;;  %v4428_v2 = vcombine.low %v720_v61, %v730_v24  ;;  %v765_v42 = vshll.u32 %v4366_v57, 16  ;;  %v771_v60 = vrot.slane %v769_v58, 4 }
  0x36   : > { %v739_v43 = vrot.slane %v738_v23, 4  ;;  %v762_v52 = vor.u32 %v761_v34, %v758_v4  ;;  %v775_v5 = vshll.u32 %v4412_v17, 16  ;;  %v753_v61 = vrot.slane %v751_v28, 5  ;;  %v4456_v28 = vld [vmem:[%s4164_s25 + $0x90] sm:$0xf] }
  0x37   : > { %3486 = vmatmul.mubr.msk.bf16.gmra.mrb[16].mxu1 %vm314_vm1, %v4393_v47  ;;  %v4424_v63 = vrot.slane %v5363_v36, 4  ;;  %5364 = vst [vmem:[#allocation14_spill] sm:$0xff] %v4428_v2  ;;  %v743_v47 = vrot.slane %v741_v11, 5  ;;  %3614 = vmatmul.mubr.msk.bf16.gmra.mrb[8].mxu0 %vm314_vm1, %v4428_v2  ;;  %v767_v24 = vrot.slane %v765_v42, 5  ;;  %v4442_v11 = vcombine.low %v4417_v30, %v4420_v35  ;;  %v4459_v42 = vld [vmem:[%s4164_s25 + $0x94] sm:$0xf] }
  0x38   : > { %v5366_v23 = vshll.u32 %v4167_v6, 16  ;;  %v1276_v58 = vrot.slane %v4190_v14, 5  ;;  %v763_v0 = vrot.slane %v762_v52, 4  ;;  %v777_v16 = vrot.slane %v775_v5, 5 }
  0x39   : > { %v748_v36 = vor.u32 %v747_v22, %v743_v47  ;;  %5365 = vst [vmem:[#allocation15_spill] sm:$0xff] %v4442_v11  ;;  %v744_v34 = vsel %vm4257_vm4, %v739_v43, %v743_v47  ;;  %v772_v27 = vor.u32 %v771_v60, %v767_v24  ;;  %3489 = vmatprep.mubr.msk.bf16.mxu1 %vm314_vm1, %v4442_v11  ;;  %v4461_v14 = vrot.slane %v573_v20, 5 }
  0x3a   : > { %v569_v4 = vrot.slane %v5366_v23, 5  ;;  %v4453_v22 = vcombine.low %v4432_v3, %v4436_v59  ;;  %v579_v47 = vrot.slane %v577_v41, 4  ;;  %v1272_v43 = vrot.slane %v4214_v21, 5 }
  0x3b   : > { %v749_v56 = vrot.slane %v748_v36, 4  ;;  %v768_v52 = vsel %vm4257_vm4, %v763_v0, %v767_v24  ;;  %v773_v36 = vrot.slane %v772_v27, 4  ;;  %v3153_v20 = vrot.slane %v4173_v8, 9  ;;  %v4489_v27 = vld [vmem:[%s4164_s25 + $0xa0] sm:$0xf] }
  0x3c   : > { %5367 = vst [vmem:[#allocation16_spill] sm:$0xff] %v4453_v22  ;;  %v1269_v21 = vrot.slane %v4178_v10, 5  ;;  %v3154_v41 = vrot.slane %v4185_v12, 9  ;;  %v1278_v0 = vrot.slane %v1276_v58, 4  ;;  %v4483_v23 = vcombine.low %v4456_v28, %v4459_v42 }
  0x3d   : > { %v754_v5 = vsel %vm4257_vm4, %v749_v56, %v753_v61  ;;  %v4486_v56 = vld [vmem:[%s4164_s25 + $0x9c] sm:$0xf]  ;;  %v1279_v61 = vrot.slane %v4233_v31, 5  ;;  %v778_v8 = vsel %vm4257_vm4, %v773_v36, %v777_v16  ;;  %v4511_v36 = vld [vmem:[%s4164_s25 + $0xa8] sm:$0xf] }
  0x3e   : > { %v4479_v24 = vcombine.low %v744_v34, %v754_v5  ;;  %5371 = vst [vmem:[#allocation18_spill] sm:$0xff] %v4483_v23  ;;  %v1270_v10 = vsel %vm4468_vm7, %v3153_v20, %v1269_v21  ;;  %v1271_v12 = vrot.slane %v1269_v21, 4  ;;  %v4498_v34 = vcombine.low %v768_v52, %v778_v8  ;;  %v4514_v20 = vld [vmem:[%s4164_s25 + $0xac] sm:$0xf] }
  0x3f   : > { %3490 = vmatmul.mubr.msk.bf16.gmra.mrb[20].mxu1 %vm314_vm1, %v4453_v22  ;;  %v570_v5 = vor.u32 %v569_v4, %v4424_v63  ;;  %v5323_v22 = vrot.slane %v4170_v7, 5  ;;  %v4508_v16 = vcombine.low %v4486_v56, %v4489_v27  ;;  %v580_v52 = vor.u32 %v579_v47, %v4461_v14 }
  0x40   : > { %5370 = vst [vmem:[#allocation17_spill] sm:$0xff] %v4479_v24  ;;  %3617 = vmatprep.mubr.msk.bf16.mxu0 %vm314_vm1, %v4479_v24  ;;  %5372 = vst [vmem:[#allocation19_spill] sm:$0xff] %v4498_v34  ;;  %3493 = vmatprep.mubr.msk.bf16.mxu1 %vm314_vm1, %v4483_v23  ;;  %v1273_v31 = vsel %vm4468_vm7, %v1271_v12, %v1272_v43  ;;  %v3155_v4 = vrot.slane %v4205_v18, 9  ;;  %v1283_v43 = vrot.slane %v4208_v19, 5  ;;  %v1286_v12 = vrot.slane %v4275_v1, 5 }
  0x41   : > { %5373 = vst [vmem:[#allocation20_spill] sm:$0xff] %v4508_v16  ;;  %3618 = vmatmul.mubr.msk.bf16.gmra.mrb[12].mxu0 %vm314_vm1, %v4498_v34  ;;  %v4519_v63 = vcombine.low %v1270_v10, %v1273_v31  ;;  %v1277_v21 = vsel %vm4468_vm7, %v3154_v41, %v1276_v58  ;;  %v1280_v8 = vsel %vm4468_vm7, %v1278_v0, %v1279_v61  ;;  %v1290_v47 = vrot.slane %v4244_v45, 5  ;;  %v4547_v41 = vld [vmem:[%s4164_s25 + $0xb4] sm:$0xf]  ;;  %v4564_v58 = vld [vmem:[%s4164_s25 + $0x8] sm:$0x1] }
  0x42   : > { %v1284_v18 = vsel %vm4468_vm7, %v3155_v4, %v1283_v43  ;;  %v1285_v10 = vrot.slane %v1283_v43, 4  ;;  %v4535_v19 = vcombine.low %v4511_v36, %v4514_v20  ;;  %v4540_v1 = vrot.slane %v5323_v22, 4 }
  0x43   : > { %3639 = vmatprep.mubr.msk.bf16.mxu0 %vm314_vm1, %v4519_v63  ;;  %v2323_v45 = vsel %vm363_vm0, %v4303_v38, 0  ;;  %v4551_v0 = vsel %vm363_vm0, %v4195_v15, 0  ;;  %v571_v61 = vrot.slane %v570_v5, 4  ;;  %v4553_v31 = vcombine.low %v1277_v21, %v1280_v8  ;;  %v4561_v38 = vld [vmem:[%s4164_s25 + $0xb8] sm:$0xf] }
  0x44   : > { %5374 = vst [vmem:[#allocation21_spill] sm:$0xff] %v4535_v19  ;;  %v1287_v4 = vsel %vm4468_vm7, %v1285_v10, %v1286_v12  ;;  %v3156_v43 = vrot.slane %v4238_v40, 9  ;;  %v581_v22 = vrot.slane %v580_v52, 4  ;;  %v1292_v15 = vrot.slane %v1290_v47, 4 }
  0x45   : > { %v1293_v5 = vrot.slane %v4290_v33, 5  ;;  %v3157_v8 = vrot.slane %v4249_v50, 9  ;;  %v1297_v12 = vrot.slane %v4252_v51, 5  ;;  %v1300_v40 = vrot.slane %v4344_v29, 5  ;;  %v4583_v33 = vld [vmem:[%s5300_s1 + $0xe] sm:$0x3] }
  0x46   : > { %v4577_v52 = vcombine.low %v4547_v41, %v4561_v38  ;;  %v1291_v29 = vsel %vm4468_vm7, %v3156_v43, %v1290_v47  ;;  %v1304_v10 = vrot.slane %v4311_v44, 5  ;;  %v576_v51 = vsel %vm4257_vm4, %v571_v61, %v4461_v14 }
  0x47   : > { %3494 = vmatmul.mubr.msk.bf16.gmra.mrb[24].mxu1 %vm314_vm1, %v4508_v16  ;;  %v4566_v16 = vcombine.low %v1284_v18, %v1287_v4  ;;  %v583_v18 = vshll.u32 %v4564_v58, 16  ;;  %v1299_v4 = vrot.slane %v1297_v12, 4  ;;  %v1298_v47 = vsel %vm4468_vm7, %v3157_v8, %v1297_v12 }
  0x48   : > { %3497 = vmatprep.mubr.msk.bf16.mxu1 %vm314_vm1, %v4535_v19  ;;  %5376 = vst [vmem:[#allocation23_spill] sm:$0xff] %v4577_v52  ;;  %v1294_v19 = vsel %vm4468_vm7, %v1292_v15, %v1293_v5  ;;  %v1311_v43 = vrot.slane %v4318_v54, 5  ;;  %v3158_v54 = vrot.slane %v4298_v37, 9  ;;  %v3159_v14 = vrot.slane %v4314_v46, 9  ;;  %v4648_v46 = vld [vmem:[%s4164_s25 + $0x80] sm:$0x1] }
  0x49   : > { %5375 = vst [vmem:[#allocation22_spill] sm:$0xff] %v4566_v16  ;;  %3640 = vmatmul.mubr.msk.bf16.vlgmr.msra.gmra.mrb[0].mxu0 %vm314_vm1, %v4553_v31  ;;  %v585_v50 = vrot.slane %v583_v18, 5  ;;  %v4615_v8 = vcombine.low %v1291_v29, %v1294_v19  ;;  %v1306_v18 = vrot.slane %v1304_v10, 4  ;;  %v1318_v19 = vrot.slane %v4366_v57, 5  ;;  %v4680_v15 = vld [vmem:[%s4164_s25 + $0x98] sm:$0x1] }
  0x4a   : > { %3672 = vmatpush3.bf16.msra.mxu0 %v2323_v45  ;;  %3643 = vmatprep.mubr.msk.bf16.mxu0 %vm314_vm1, %v4566_v16  ;;  %v1301_v45 = vsel %vm4468_vm7, %v1299_v4, %v1300_v40  ;;  %v1307_v4 = vrot.slane %v4355_v48, 5  ;;  %v1313_v44 = vrot.slane %v1311_v43, 4  ;;  %v1305_v57 = vsel %vm4468_vm7, %v3158_v54, %v1304_v10  ;;  %v4658_v54 = vld [vmem:[%s5300_s1 + $0x6] sm:$0x3] }
  0x4b   : > { %4071 = vmatprep.subr.msk.bf16.mxu0 %vm363_vm0, %v4583_v33  ;;  %v586_v61 = vsel %vm4257_vm4, %v581_v22, %v585_v50  ;;  %5377 = vst [vmem:[#allocation24_spill] sm:$0xff] %v4615_v8  ;;  %v4618_v40 = vcombine.low %v1298_v47, %v1301_v45  ;;  %v1314_v22 = vrot.slane %v4396_v9, 5  ;;  %v1325_v47 = vrot.slane %v4383_v25, 5 }
  0x4c   : > { %v3120_v12 = vcombine.low %v576_v51, %v586_v61  ;;  %v1308_v45 = vsel %vm4468_vm7, %v1306_v18, %v1307_v4  ;;  %v1312_v61 = vsel %vm4468_vm7, %v3159_v14, %v1311_v43  ;;  %v1332_v9 = vrot.slane %v4420_v35, 5 }
  0x4d   : > { %5378 = vst [vmem:[#allocation25_spill] sm:$0xff] %v4618_v40  ;;  %v1315_v29 = vsel %vm4468_vm7, %v1313_v44, %v1314_v22  ;;  %v3160_v48 = vrot.slane %v4363_v55, 9  ;;  %v1320_v51 = vrot.slane %v1318_v19, 4  ;;  %v1321_v10 = vrot.slane %v4412_v17, 5 }
  0x4e   : > { %v3161_v14 = vrot.slane %v4372_v62, 9  ;;  %v3162_v44 = vrot.slane %v4417_v30, 9  ;;  %v1339_v55 = vrot.slane %v4436_v59, 5  ;;  %v4667_v17 = vcombine.low %v1305_v57, %v1308_v45 }
  0x4f   : > { %3498 = vmatmul.mubr.msk.bf16.gmra.mrb[28].mxu1 %vm314_vm1, %v4577_v52  ;;  %v1327_v4 = vrot.slane %v1325_v47, 4  ;;  %v4676_v43 = vcombine.low %v1312_v61, %v1315_v29  ;;  %v1334_v50 = vrot.slane %v1332_v9, 4  ;;  %v1335_v37 = vrot.slane %v4648_v46, 5  ;;  %v4697_v52 = vld [vmem:[%s4164_s25 + $0xa4] sm:$0x1] }
  0x50   : > { %3503 = vmatprep.mubr.msk.bf16.mxu1 %vm314_vm1, %v3120_v12  ;;  %v4645_v12 = vld [vmem:[%s4164_s25 + $0x74] sm:$0x1]  ;;  %5379 = vst [vmem:[#allocation26_spill] sm:$0xff] %v4667_v17  ;;  %v1346_v57 = vrot.slane %v4459_v42, 5  ;;  %v1319_v45 = vsel %vm4468_vm7, %v3160_v48, %v1318_v19  ;;  %v1322_v18 = vsel %vm4468_vm7, %v1320_v51, %v1321_v10  ;;  %v1353_v29 = vrot.slane %v4489_v27, 5 }
  0x51   : > { %3644 = vmatmul.mubr.msk.bf16.gmra.mrb[4].mxu0 %vm314_vm1, %v4615_v8  ;;  %v1328_v22 = vrot.slane %v4645_v12, 5  ;;  %5380 = vst [vmem:[#allocation27_spill] sm:$0xff] %v4676_v43  ;;  %v1326_v61 = vsel %vm4468_vm7, %v3161_v14, %v1325_v47  ;;  %v1333_v5 = vsel %vm4468_vm7, %v3162_v44, %v1332_v9  ;;  %v3163_v21 = vrot.slane %v4432_v3, 9 }
  0x52   : > { %3647 = vmatprep.mubr.msk.bf16.mxu0 %vm314_vm1, %v4618_v40  ;;  %v3164_v48 = vrot.slane %v4456_v28, 9  ;;  %v1349_v47 = vrot.slane %v4680_v15, 5  ;;  %v1336_v9 = vsel %vm4468_vm7, %v1334_v50, %v1335_v37  ;;  %v1348_v10 = vrot.slane %v1346_v57, 4 }
  0x53   : > { %v1329_v19 = vsel %vm4468_vm7, %v1327_v4, %v1328_v22  ;;  %v3165_v14 = vrot.slane %v4486_v56, 9  ;;  %v1360_v44 = vrot.slane %v4514_v20, 5  ;;  %v1356_v4 = vrot.slane %v4697_v52, 5  ;;  %v4714_v22 = vld [vmem:[%s4164_s25 + $0xb0] sm:$0x1] }
  0x54   : > { %v5381_v23 = vshrl.u32 %v4372_v62, 16  ;;  %v5382_v40 = vshll.u32 %v4372_v62, 16  ;;  %v4724_v37 = vcombine.low %v1326_v61, %v1329_v19  ;;  %v1340_v50 = vsel %vm4468_vm7, %v3163_v21, %v1339_v55 }
  0x55   : > { %v789_v8 = vshll.u32 %v4383_v25, 16  ;;  %v4729_v16 = vcombine.low %v1333_v5, %v1336_v9  ;;  %v1354_v21 = vsel %vm4468_vm7, %v3165_v14, %v1353_v29  ;;  %v1362_v5 = vrot.slane %v1360_v44, 4 }
  0x56   : > { %v785_v11 = vrot.slane %v5382_v40, 5  ;;  %v3166_v40 = vrot.slane %v4511_v36, 9 }
  0x57   : > { %3504 = vmatmul.mubr.msk.bf16.vlgmr.msra.gmra.mrb[0].mxu1 %vm314_vm1, %v4284_v13  ;;  %v4674_v13 = vld [vmem:[%s4164_s25 + $0x8c] sm:$0x1]  ;;  %v4747_v19 = vrot.slane %v789_v8, 5 }
  0x58   : > { %3507 = vmatprep.mubr.msk.bf16.mxu1 %vm314_vm1, %v4305_v39  ;;  %3536 = vmatpush3.bf16.msra.mxu1 %v4551_v0  ;;  %v1341_v39 = vrot.slane %v1339_v55, 4  ;;  %v1342_v51 = vrot.slane %v4674_v13, 5  ;;  %v1355_v0 = vrot.slane %v1353_v29, 4  ;;  %v1363_v55 = vrot.slane %v4714_v22, 5 }
  0x59   : > { %4066 = vmatprep.subr.msk.bf16.mxu1 %vm363_vm0, %v4658_v54  ;;  %3648 = vmatmul.mubr.msk.bf16.gmra.mrb[8].mxu0 %vm314_vm1, %v4667_v17  ;;  %v782_v17 = vrot.slane %v5381_v23, 4  ;;  %v1347_v23 = vsel %vm4468_vm7, %v3164_v48, %v1346_v57  ;;  %v813_v57 = vshll.u32 %v4420_v35, 16  ;;  %v5385_v29 = vshll.u32 %v4417_v30, 16 }
  0x5a   : > { %3651 = vmatprep.mubr.msk.bf16.mxu0 %vm314_vm1, %v4676_v43  ;;  %v4720_v43 = vcombine.low %v1319_v45, %v1322_v18  ;;  %v1343_v62 = vsel %vm4468_vm7, %v1341_v39, %v1342_v51  ;;  %v1350_v18 = vsel %vm4468_vm7, %v1348_v10, %v1349_v47  ;;  %v1357_v45 = vsel %vm4468_vm7, %v1355_v0, %v1356_v4 }
  0x5b   : > { %v786_v61 = vor.u32 %v785_v11, %v782_v17  ;;  %v1367_v39 = vrot.slane %v4561_v38, 5  ;;  %v5383_v51 = vshrl.u32 %v4383_v25, 16  ;;  %v5384_v47 = vshrl.u32 %v4417_v30, 16  ;;  %v4762_v17 = vld [vmem:[%s4164_s25 + $0xbc] sm:$0x1] }
  0x5c   : > { %v809_v10 = vrot.slane %v5385_v29, 5  ;;  %v4757_v0 = vcombine.low %v1340_v50, %v1343_v62  ;;  %v4759_v11 = vcombine.low %v1347_v23, %v1350_v18  ;;  %v4764_v8 = vrot.slane %v813_v57, 5  ;;  %v4794_v29 = vld [vmem:[%s4164_s25 + $0xc0] sm:$0xf] }
  0x5d   : > { %v795_v48 = vrot.slane %v5383_v51, 4  ;;  %v806_v9 = vrot.slane %v5384_v47, 4  ;;  %v5386_v25 = vshrl.u32 %v4420_v35, 16  ;;  %v4770_v4 = vcombine.low %v1354_v21, %v1357_v45 }
  0x5e   : > { %v1361_v30 = vsel %vm4468_vm7, %v3166_v40, %v1360_v44  ;;  %v799_v50 = vshll.u32 %v4645_v12, 16  ;;  %v3167_v62 = vrot.slane %v4547_v41, 9  ;;  %v1364_v23 = vsel %vm4468_vm7, %v1362_v5, %v1363_v55 }
  0x5f   : > { %3508 = vmatmul.mubr.msk.bf16.gmra.mrb[4].mxu1 %vm314_vm1, %v4349_v32  ;;  %v819_v14 = vrot.slane %v5386_v25, 4  ;;  %v787_v18 = vrot.slane %v786_v61, 4  ;;  %v1369_v57 = vrot.slane %v1367_v39, 4  ;;  %v837_v35 = vshll.u32 %v4436_v59, 16 }
  0x60   : > { %3511 = vmatprep.mubr.msk.bf16.mxu1 %vm314_vm1, %v4357_v49  ;;  %v796_v21 = vor.u32 %v795_v48, %v4747_v19  ;;  %v1370_v45 = vrot.slane %v4762_v17, 5  ;;  %v810_v44 = vor.u32 %v809_v10, %v806_v9  ;;  %v823_v12 = vshll.u32 %v4648_v46, 16 }
  0x61   : > { %3652 = vmatmul.mubr.msk.bf16.gmra.mrb[12].mxu0 %vm314_vm1, %v4720_v43  ;;  %v820_v40 = vor.u32 %v819_v14, %v4764_v8  ;;  %v5387_v5 = vshrl.u32 %v4432_v3, 16  ;;  %v5388_v61 = vshll.u32 %v4432_v3, 16  ;;  %v5389_v47 = vshrl.u32 %v4436_v59, 16 }
  0x62   : > { %3655 = vmatprep.mubr.msk.bf16.mxu0 %vm314_vm1, %v4724_v37  ;;  %v4796_v9 = vrot.slane %v837_v35, 5  ;;  %v5390_v46 = vshrl.u32 %v4456_v28, 16  ;;  %v5391_v25 = vshll.u32 %v4456_v28, 16  ;;  %v801_v3 = vrot.slane %v799_v50, 5 }
  0x63   : > { %v830_v55 = vrot.slane %v5387_v5, 4  ;;  %v833_v51 = vrot.slane %v5388_v61, 5  ;;  %v843_v48 = vrot.slane %v5389_v47, 4  ;;  %v4803_v5 = vcombine.low %v1361_v30, %v1364_v23 }
  0x64   : > { %v854_v10 = vrot.slane %v5390_v46, 4  ;;  %v857_v14 = vrot.slane %v5391_v25, 5  ;;  %v1368_v59 = vsel %vm4468_vm7, %v3167_v62, %v1367_v39  ;;  %v5392_v61 = vshrl.u32 %v4459_v42, 16  ;;  %v4813_v46 = vld [vmem:[%s4164_s25 + $0xc4] sm:$0xf] }
  0x65   : > { %v792_v35 = vsel %vm4257_vm4, %v787_v18, %v4747_v19  ;;  %v811_v28 = vrot.slane %v810_v44, 4  ;;  %v1371_v30 = vsel %vm4468_vm7, %v1369_v57, %v1370_v45  ;;  %v4822_v39 = vld [vmem:[%s4164_s25 + $0xc8] sm:$0x1]  ;;  %v834_v50 = vor.u32 %v833_v51, %v830_v55 }
  0x66   : > { %v867_v47 = vrot.slane %v5392_v61, 4  ;;  %v847_v62 = vshll.u32 %v4674_v13, 16  ;;  %v821_v19 = vrot.slane %v820_v40, 4  ;;  %v825_v23 = vrot.slane %v823_v12, 5 }
  0x67   : > { %3512 = vmatmul.mubr.msk.bf16.gmra.mrb[8].mxu1 %vm314_vm1, %v4405_v26  ;;  %v797_v26 = vrot.slane %v796_v21, 4  ;;  %v858_v18 = vor.u32 %v857_v14, %v854_v10  ;;  %v2103_v21 = vrot.slane %v4813_v46, 5  ;;  %v871_v57 = vshll.u32 %v4680_v15, 16 }
  0x68   : > { %3515 = vmatprep.mubr.msk.bf16.mxu1 %vm314_vm1, %v4428_v2  ;;  %v861_v2 = vshll.u32 %v4459_v42, 16  ;;  %v3237_v42 = vrot.slane %v4794_v29, 9  ;;  %v885_v45 = vshll.u32 %v4489_v27, 16  ;;  %v4837_v55 = vcombine.low %v1368_v59, %v1371_v30 }
  0x69   : > { %3656 = vmatmul.mubr.msk.bf16.gmra.mrb[16].mxu0 %vm314_vm1, %v4729_v16  ;;  %v802_v13 = vsel %vm4257_vm4, %v797_v26, %v801_v3  ;;  %v2106_v12 = vrot.slane %v4822_v39, 5  ;;  %v816_v40 = vsel %vm4257_vm4, %v811_v28, %v4764_v8  ;;  %v835_v15 = vrot.slane %v834_v50, 4 }
  0x6a   : > { %v4815_v25 = vrot.slane %v861_v2, 5  ;;  %3659 = vmatprep.mubr.msk.bf16.mxu0 %vm314_vm1, %v4757_v0  ;;  %v844_v2 = vor.u32 %v843_v48, %v4796_v9  ;;  %v849_v51 = vrot.slane %v847_v62, 5  ;;  %v5393_v48 = vshrl.u32 %v4486_v56, 16 }
  0x6b   : > { %v5394_v14 = vshll.u32 %v4486_v56, 16  ;;  %v826_v26 = vsel %vm4257_vm4, %v821_v19, %v825_v23  ;;  %v859_v59 = vrot.slane %v858_v18, 4  ;;  %v873_v8 = vrot.slane %v871_v57, 5 }
  0x6c   : > { %v868_v44 = vor.u32 %v867_v47, %v4815_v25  ;;  %v878_v10 = vrot.slane %v5393_v48, 4  ;;  %v845_v3 = vrot.slane %v844_v2, 4  ;;  %v909_v47 = vshll.u32 %v4514_v20, 16 }
  0x6d   : > { %v881_v61 = vrot.slane %v5394_v14, 5  ;;  %v4852_v28 = vrot.slane %v885_v45, 5  ;;  %v5395_v50 = vshrl.u32 %v4489_v27, 16  ;;  %v2105_v48 = vrot.slane %v2103_v21, 4 }
  0x6e   : > { %v869_v30 = vrot.slane %v868_v44, 4  ;;  %v5396_v56 = vshrl.u32 %v4511_v36, 16  ;;  %v4864_v23 = vcombine.low %v816_v40, %v826_v26  ;;  %v840_v2 = vsel %vm4257_vm4, %v835_v15, %v4796_v9 }
  0x6f   : > { %3516 = vmatmul.mubr.msk.bf16.gmra.mrb[12].mxu1 %vm314_vm1, %v4479_v24  ;;  %v891_v62 = vrot.slane %v5395_v50, 4  ;;  %v5397_v24 = vshll.u32 %v4511_v36, 16  ;;  %v882_v27 = vor.u32 %v881_v61, %v878_v10  ;;  %v850_v18 = vsel %vm4257_vm4, %v845_v3, %v849_v51 }
  0x70   : > { %3519 = vmatprep.mubr.msk.bf16.mxu1 %vm314_vm1, %v4498_v34  ;;  %v4856_v34 = vcombine.low %v792_v35, %v802_v13  ;;  %v902_v14 = vrot.slane %v5396_v56, 4  ;;  %v895_v35 = vshll.u32 %v4697_v52, 16  ;;  %v911_v36 = vrot.slane %v909_v47, 5 }
  0x71   : > { %v905_v19 = vrot.slane %v5397_v24, 5  ;;  %3660 = vmatmul.mubr.msk.bf16.gmra.mrb[20].mxu0 %vm314_vm1, %v4759_v11  ;;  %v5398_v24 = vshrl.u32 %v4514_v20, 16  ;;  %v5399_v57 = vrot.slane %v4170_v7, 5  ;;  %v5400_v45 = vrot.slane %v4167_v6, 9 }
  0x72   : > { %3663 = vmatprep.mubr.msk.bf16.mxu0 %vm314_vm1, %v4770_v4  ;;  %v864_v52 = vsel %vm4257_vm4, %v859_v59, %v4815_v25  ;;  %v874_v13 = vsel %vm4257_vm4, %v869_v30, %v873_v8  ;;  %v892_v40 = vor.u32 %v891_v62, %v4852_v28  ;;  %v919_v20 = vshll.u32 %v4714_v22, 16 }
  0x73   : > { %v915_v44 = vrot.slane %v5398_v24, 4  ;;  %v4882_v9 = vsel %vm4468_vm7, %v5400_v45, %v5399_v57  ;;  %v2104_v6 = vsel %vm4468_vm7, %v3237_v42, %v2103_v21  ;;  %v2107_v7 = vsel %vm4468_vm7, %v2105_v48, %v2106_v12 }
  0x74   : > { %v906_v15 = vor.u32 %v905_v19, %v902_v14  ;;  %v1265_v51 = vrot.slane %v4564_v58, 5  ;;  %v4900_v25 = vcombine.low %v840_v2, %v850_v18  ;;  %v883_v10 = vrot.slane %v882_v27, 4 }
  0x75   : > { %v897_v61 = vrot.slane %v895_v35, 5  ;;  %v933_v22 = vshll.u32 %v4561_v38, 16  ;;  %v4903_v26 = vcombine.low %v864_v52, %v874_v13  ;;  %v916_v3 = vor.u32 %v915_v44, %v911_v36 }
  0x76   : > { %v5401_v42 = vshrl.u32 %v4547_v41, 16  ;;  %v1266_v12 = vsel %vm4468_vm7, %v4540_v1, %v1265_v51  ;;  %v893_v58 = vrot.slane %v892_v40, 4  ;;  %v921_v59 = vrot.slane %v919_v20, 5 }
  0x77   : > { %3520 = vmatmul.mubr.msk.bf16.gmra.mrb[16].mxu1 %vm314_vm1, %v4856_v34  ;;  %v5402_v47 = vshll.u32 %v4547_v41, 16  ;;  %v3169_v8 = vcombine.low %v4882_v9, %v1266_v12  ;;  %v907_v50 = vrot.slane %v906_v15, 4  ;;  %v1873_v62 = vshrl.u32 %v4794_v29, 16 }
  0x78   : > { %3523 = vmatprep.mubr.msk.bf16.mxu1 %vm314_vm1, %v4864_v23  ;;  %v926_v21 = vrot.slane %v5401_v42, 4  ;;  %v1876_v48 = vshll.u32 %v4794_v29, 16  ;;  %v1882_v56 = vshll.u32 %v4813_v46, 16  ;;  %v935_v14 = vrot.slane %v933_v22, 5  ;;  %v5404_v42 = vld [vmem:[#allocation4_spill] sm:$0xff] }
  0x79   : > { %v929_v30 = vrot.slane %v5402_v47, 5  ;;  %3664 = vmatmul.mubr.msk.bf16.gmra.mrb[24].mxu0 %vm314_vm1, %v4803_v5  ;;  %v5403_v1 = vshrl.u32 %v4561_v38, 16  ;;  %v1886_v2 = vshrl.u32 %v4813_v46, 16  ;;  %v1892_v41 = vshll.u32 %v4822_v39, 16 }
  0x7a   : > { %3667 = vmatprep.mubr.msk.bf16.mxu0 %vm314_vm1, %v4837_v55  ;;  %v917_v27 = vrot.slane %v916_v3, 4  ;;  %v1875_v35 = vrot.slane %v1873_v62, 4  ;;  %v1878_v18 = vrot.slane %v1876_v48, 5  ;;  %v1884_v24 = vrot.slane %v1882_v56, 5  ;;  %v5406_v62 = vld [vmem:[#allocation6_spill] sm:$0xff]  ;;  %v5408_v48 = vld [vmem:[#allocation9_spill] sm:$0xff] }
  0x7b   : > { %v939_v19 = vrot.slane %v5403_v1, 4  ;;  %v4924_v44 = vcombine.low %v2104_v6, %v2107_v7  ;;  %v1888_v57 = vrot.slane %v1886_v2, 4  ;;  %v888_v38 = vsel %vm4257_vm4, %v883_v10, %v4852_v28  ;;  %v5410_v1 = vld [vmem:[#allocation11_spill] sm:$0xff] }
  0x7c   : > { %v898_v39 = vsel %vm4257_vm4, %v893_v58, %v897_v61  ;;  %v943_v45 = vshll.u32 %v4762_v17, 16  ;;  %v1879_v9 = vor.u32 %v1878_v18, %v1875_v35  ;;  %v930_v52 = vor.u32 %v929_v30, %v926_v21  ;;  %v3293_v30 = vld [vmem:[%s5300_s1 + $0x10] sm:$0x3]  ;;  %v5414_v2 = vld [vmem:[#allocation15_spill] sm:$0xff]  ;;  %v5418_v18 = vld [vmem:[#allocation18_spill] sm:$0xff] }
  0x7d   : > { %v940_v13 = vor.u32 %v939_v19, %v935_v14  ;;  %v1889_v40 = vor.u32 %v1888_v57, %v1884_v24  ;;  %v1894_v20 = vrot.slane %v1892_v41, 5  ;;  %v912_v6 = vsel %vm4257_vm4, %v907_v50, %v911_v36  ;;  %v5405_v50 = vld [vmem:[#allocation5_spill] sm:$0xff]  ;;  %v5413_v19 = vld [vmem:[#allocation12_spill] sm:$0xff] }
  0x7e   : > { %v922_v7 = vsel %vm4257_vm4, %v917_v27, %v921_v59  ;;  %v1880_v28 = vrot.slane %v1879_v9, 4  ;;  %v4940_v51 = vcombine.low %v888_v38, %v898_v39  ;;  %v945_v10 = vrot.slane %v943_v45, 5  ;;  %v5415_v41 = vld [vmem:[#allocation25_spill] sm:$0xff]  ;;  %v5416_v27 = vld [vmem:[#allocation26_spill] sm:$0xff]  ;;  %v5417_v35 = vld [vmem:[#allocation16_spill] sm:$0xff] }
  0x7f   : > { %3524 = vmatmul.mubr.msk.bf16.gmra.mrb[20].mxu1 %vm314_vm1, %v4900_v25  ;;  %v1890_v15 = vrot.slane %v1889_v40, 4  ;;  %v4946_v61 = vcombine.low %v912_v6, %v922_v7  ;;  %v931_v22 = vrot.slane %v930_v52, 4  ;;  %v941_v3 = vrot.slane %v940_v13, 4  ;;  %v5420_v57 = vld [vmem:[#allocation20_spill] sm:$0xff]  ;;  %v5421_v38 = vld [vmem:[#allocation21_spill] sm:$0xff]  ;;  %v5422_v45 = vld [vmem:[#allocation23_spill] sm:$0xff] }
  0x80   : > { %3527 = vmatprep.mubr.msk.bf16.mxu1 %vm314_vm1, %v4903_v26  ;;  %v1885_v17 = vsel %vm4257_vm4, %v1880_v28, %v1884_v24  ;;  %v2551_v59 = vsel %vm363_vm0, %v4583_v33, 0  ;;  %v5407_v33 = vld [vmem:[#allocation7_spill] sm:$0xff]  ;;  %v1677_v56 = vsel %vm363_vm0, %v4658_v54, 0  ;;  %v5411_v54 = vld [vmem:[#allocation22_spill] sm:$0xff]  ;;  %v5025_v39 = vcombine.low %v4794_v29, %v4813_v46  ;;  %v5035_v52 = vld [vmem:[%s4164_s25 + $0xd0] sm:$0xf] }
  0x81   : > { %3668 = vmatmul.mubr.msk.bf16.gmra.mrb[28].mxu0 %vm314_vm1, %v4924_v44  ;;  %v1895_v36 = vsel %vm4257_vm4, %v1890_v15, %v1894_v20  ;;  %v936_v12 = vsel %vm4257_vm4, %v931_v22, %v935_v14  ;;  %v946_v58 = vsel %vm4257_vm4, %v941_v3, %v945_v10  ;;  %v5409_v14 = vld [vmem:[#allocation10_spill] sm:$0xff]  ;;  %v5419_v24 = vld [vmem:[#allocation27_spill] sm:$0xff]  ;;  %v5423_v29 = vld [vmem:[#allocation8_spill] sm:$0xff]  ;;  %v2763_v46 = vsel %vm363_vm0, %v3293_v30, 0 }
  0x82   : > { %3673 = vmatprep.mubr.msk.bf16.mxu0 %vm314_vm1, %v5404_v42  ;;  %v4952_v21 = vcombine.low %v1885_v17, %v1895_v36  ;;  %v4964_v47 = vcombine.low %v936_v12, %v946_v58  ;;  %v5032_v9 = vld [vmem:[%s4164_s25 + $0xcc] sm:$0xf]  ;;  %v5425_v20 = vld [vmem:[#allocation13_spill] sm:$0xff]  ;;  %v5426_v6 = vld [vmem:[#allocation14_spill] sm:$0xff]  ;;  %v2532_v10 = vshrl.u32 %v5035_v52, 16  ;;  %v2528_v17 = vshll.u32 %v5035_v52, 16 }
  0x83   : > { %v3257_v13 = vcombine.low %v5032_v9, %v5035_v52  ;;  %v5424_v40 = vld [vmem:[#allocation3_spill] sm:$0xff]  ;;  %v2519_v28 = vshrl.u32 %v5032_v9, 16  ;;  %v2522_v15 = vshll.u32 %v5032_v9, 16  ;;  %v225_v12 = vld [vmem:[%s4164_s25 + $0xd4] sm:$0x1]  ;;  %v2749_v53 = vrot.slane %v5035_v52, 5 }
  0x84   : > { %v5429_v7 = vld [vmem:[#allocation19_spill] sm:$0xff]  ;;  %v2530_v36 = vrot.slane %v2528_v17, 5 }
  0x85   : > { %v2521_v22 = vrot.slane %v2519_v28, 4  ;;  %v2524_v3 = vrot.slane %v2522_v15, 5 }
  0x87   : > { %3528 = vmatmul.mubr.msk.bf16.gmra.mrb[24].mxu1 %vm314_vm1, %v4940_v51  ;;  %v2525_v58 = vor.u32 %v2524_v3, %v2521_v22 }
  0x88   : > { %3531 = vmatprep.mubr.msk.bf16.mxu1 %vm314_vm1, %v4946_v61 }
  0x89   : > { %3674 = vmatmul.mubr.msk.bf16.vlgmr.msra.gmra.mrb[0].mxu0 %vm314_vm1, %v5405_v50 }
  0x8a   : > { %3706 = vmatpush3.bf16.msra.mxu0 %v2551_v59  ;;  %3677 = vmatprep.mubr.msk.bf16.mxu0 %vm314_vm1, %v5406_v62 }
  0x8b   : > { %4072 = vmatprep.subr.msk.bf16.mxu0 %vm363_vm0, %v3293_v30  ;;  %v2538_v30 = vshll.u32 %v225_v12, 16 }
  0x8f   : > { %3532 = vmatmul.mubr.msk.bf16.gmra.mrb[28].mxu1 %vm314_vm1, %v4964_v47 }
  0x90   : > { %3537 = vmatprep.mubr.msk.bf16.mxu1 %vm314_vm1, %v3169_v8  ;;  %v4100_v8 = vld [vmem:[%s5300_s1 + $0x8] sm:$0x3] }
  0x91   : > { %3678 = vmatmul.mubr.msk.bf16.gmra.mrb[4].mxu0 %vm314_vm1, %v5407_v33 }
  0x92   : > { %3681 = vmatprep.mubr.msk.bf16.mxu0 %vm314_vm1, %v5408_v48 }
  0x97   : > { %3538 = vmatmul.mubr.msk.bf16.vlgmr.msra.gmra.mrb[0].mxu1 %vm314_vm1, %v4519_v63  ;;  %v5412_v63 = vld [vmem:[#allocation24_spill] sm:$0xff] }
  0x98   : > { %3541 = vmatprep.mubr.msk.bf16.mxu1 %vm314_vm1, %v4553_v31  ;;  %3570 = vmatpush3.bf16.msra.mxu1 %v1677_v56 }
  0x99   : > { %4068 = vmatprep.subr.msk.bf16.mxu1 %vm363_vm0, %v4100_v8  ;;  %3682 = vmatmul.mubr.msk.bf16.gmra.mrb[8].mxu0 %vm314_vm1, %v5409_v14 }
  0x9a   : > { %3685 = vmatprep.mubr.msk.bf16.mxu0 %vm314_vm1, %v5410_v1 }
  0x9f   : > { %3542 = vmatmul.mubr.msk.bf16.gmra.mrb[4].mxu1 %vm314_vm1, %v5411_v54 }
  0xa0   : > { %3545 = vmatprep.mubr.msk.bf16.mxu1 %vm314_vm1, %v5412_v63 }
  0xa1   : > { %3686 = vmatmul.mubr.msk.bf16.gmra.mrb[12].mxu0 %vm314_vm1, %v5413_v19 }
  0xa2   : > { %3689 = vmatprep.mubr.msk.bf16.mxu0 %vm314_vm1, %v5414_v2 }
  0xa7   : > { %3546 = vmatmul.mubr.msk.bf16.gmra.mrb[8].mxu1 %vm314_vm1, %v5415_v41 }
  0xa8   : > { %3549 = vmatprep.mubr.msk.bf16.mxu1 %vm314_vm1, %v5416_v27 }
  0xa9   : > { %3690 = vmatmul.mubr.msk.bf16.gmra.mrb[16].mxu0 %vm314_vm1, %v5417_v35 }
  0xaa   : > { %3693 = vmatprep.mubr.msk.bf16.mxu0 %vm314_vm1, %v5418_v18 }
  0xaf   : > { %3550 = vmatmul.mubr.msk.bf16.gmra.mrb[12].mxu1 %vm314_vm1, %v5419_v24 }
  0xb0   : > { %3553 = vmatprep.mubr.msk.bf16.mxu1 %vm314_vm1, %v4720_v43 }
  0xb1   : > { %3694 = vmatmul.mubr.msk.bf16.gmra.mrb[20].mxu0 %vm314_vm1, %v5420_v57 }
  0xb2   : > { %3697 = vmatprep.mubr.msk.bf16.mxu0 %vm314_vm1, %v5421_v38 }
  0xb7   : > { %3554 = vmatmul.mubr.msk.bf16.gmra.mrb[16].mxu1 %vm314_vm1, %v4724_v37 }
  0xb8   : > { %3557 = vmatprep.mubr.msk.bf16.mxu1 %vm314_vm1, %v4729_v16 }
  0xb9   : > { %3698 = vmatmul.mubr.msk.bf16.gmra.mrb[24].mxu0 %vm314_vm1, %v5422_v45 }
  0xba   : > { %3701 = vmatprep.mubr.msk.bf16.mxu0 %vm314_vm1, %v5025_v39 }
  0xbf   : > { %3558 = vmatmul.mubr.msk.bf16.gmra.mrb[20].mxu1 %vm314_vm1, %v4757_v0 }
  0xc0   : > { %3561 = vmatprep.mubr.msk.bf16.mxu1 %vm314_vm1, %v4759_v11 }
  0xc1   : > { %3702 = vmatmul.mubr.msk.bf16.gmra.mrb[28].mxu0 %vm314_vm1, %v3257_v13 }
  0xc2   : > { %3707 = vmatprep.mubr.msk.bf16.mxu0 %vm314_vm1, %v5423_v29 }
  0xc7   : > { %3562 = vmatmul.mubr.msk.bf16.gmra.mrb[24].mxu1 %vm314_vm1, %v4770_v4 }
  0xc8   : > { %3565 = vmatprep.mubr.msk.bf16.mxu1 %vm314_vm1, %v4803_v5 }
  0xc9   : > { %3708 = vmatmul.mubr.msk.bf16.vlgmr.msra.gmra.mrb[0].mxu0 %vm314_vm1, %v4349_v32  ;;  %v5427_v32 = vld [vmem:[#allocation2_spill] sm:$0xff] }
  0xca   : > { %3740 = vmatpush3.bf16.msra.mxu0 %v2763_v46  ;;  %3711 = vmatprep.mubr.msk.bf16.mxu0 %vm314_vm1, %v4357_v49  ;;  %v5428_v49 = vld [vmem:[#allocation17_spill] sm:$0xff] }
  0xcf   : > { %3566 = vmatmul.mubr.msk.bf16.gmra.mrb[28].mxu1 %vm314_vm1, %v4837_v55 }
  0xd0   : > { %3571 = vmatprep.mubr.msk.bf16.mxu1 %vm314_vm1, %v5424_v40 }
  0xd1   : > { %3712 = vmatmul.mubr.msk.bf16.gmra.mrb[4].mxu0 %vm314_vm1, %v5425_v20 }
  0xd2   : > { %3715 = vmatprep.mubr.msk.bf16.mxu0 %vm314_vm1, %v5426_v6 }
  0xd7   : > { %3572 = vmatmul.mubr.msk.bf16.vlgmr.msra.gmra.mrb[0].mxu1 %vm314_vm1, %v5404_v42  ;;  %v2534_v42 = vrot.slane %v2532_v10, 4 }
  0xd8   : > { %3575 = vmatprep.mubr.msk.bf16.mxu1 %vm314_vm1, %v5405_v50  ;;  %3774 = vmatpush3.bf16.msra.mxu1 %v5427_v32  ;;  %v2526_v50 = vrot.slane %v2525_v58, 4 }
  0xd9   : > { %3716 = vmatmul.mubr.msk.bf16.gmra.mrb[8].mxu0 %vm314_vm1, %v5428_v49  ;;  %v2535_v59 = vor.u32 %v2534_v42, %v2530_v36 }
  0xda   : > { %3719 = vmatprep.mubr.msk.bf16.mxu0 %vm314_vm1, %v5429_v7 }
  0xdf   : > { %3576 = vmatmul.mubr.msk.bf16.gmra.mrb[4].mxu1 %vm314_vm1, %v5406_v62  ;;  %v2536_v62 = vrot.slane %v2535_v59, 4 }
  0xe0   : > { %3579 = vmatprep.mubr.msk.bf16.mxu1 %vm314_vm1, %v5407_v33  ;;  %v2540_v33 = vrot.slane %v2538_v30, 5 }
  0xe1   : > { %3720 = vmatmul.mubr.msk.bf16.gmra.mrb[12].mxu0 %vm314_vm1, %v4856_v34 }
  0xe2   : > { %3723 = vmatprep.mubr.msk.bf16.mxu0 %vm314_vm1, %v4864_v23  ;;  %v2541_v56 = vsel %vm4257_vm4, %v2536_v62, %v2540_v33 }
  0xe7   : > { %3580 = vmatmul.mubr.msk.bf16.gmra.mrb[8].mxu1 %vm314_vm1, %v5408_v48  ;;  %v2531_v48 = vsel %vm4257_vm4, %v2526_v50, %v2530_v36 }
  0xe8   : > { %3583 = vmatprep.mubr.msk.bf16.mxu1 %vm314_vm1, %v5409_v14  ;;  %v3275_v8 = vcombine.low %v2531_v48, %v2541_v56 }
  0xe9   : > { %3724 = vmatmul.mubr.msk.bf16.gmra.mrb[16].mxu0 %vm314_vm1, %v4900_v25 }
  0xea   : > { %3727 = vmatprep.mubr.msk.bf16.mxu0 %vm314_vm1, %v4903_v26 }
  0xef   : > { %3584 = vmatmul.mubr.msk.bf16.gmra.mrb[12].mxu1 %vm314_vm1, %v5410_v1 }
  0xf0   : > { %3587 = vmatprep.mubr.msk.bf16.mxu1 %vm314_vm1, %v5413_v19 }
  0xf1   : > { %3728 = vmatmul.mubr.msk.bf16.gmra.mrb[20].mxu0 %vm314_vm1, %v4940_v51 }
  0xf2   : > { %3731 = vmatprep.mubr.msk.bf16.mxu0 %vm314_vm1, %v4946_v61 }
  0xf7   : > { %3588 = vmatmul.mubr.msk.bf16.gmra.mrb[16].mxu1 %vm314_vm1, %v5414_v2 }
  0xf8   : > { %3591 = vmatprep.mubr.msk.bf16.mxu1 %vm314_vm1, %v5417_v35 }
  0xf9   : > { %3732 = vmatmul.mubr.msk.bf16.gmra.mrb[24].mxu0 %vm314_vm1, %v4964_v47 }
  0xfa   : > { %3735 = vmatprep.mubr.msk.bf16.mxu0 %vm314_vm1, %v4952_v21 }
  0xff   : > { %3592 = vmatmul.mubr.msk.bf16.gmra.mrb[20].mxu1 %vm314_vm1, %v5418_v18 }
 0x100   : > { %3595 = vmatprep.mubr.msk.bf16.mxu1 %vm314_vm1, %v5420_v57 }
 0x101   : > { %3736 = vmatmul.mubr.msk.bf16.gmra.mrb[28].mxu0 %vm314_vm1, %v3275_v8 }
 0x102   : > { %3741 = vmatprep.mubr.msk.bf16.mxu0 %vm314_vm1, %v4553_v31  ;;  %v2752_v31 = vrot.slane %v225_v12, 5 }
 0x107   : > { %3596 = vmatmul.mubr.msk.bf16.gmra.mrb[24].mxu1 %vm314_vm1, %v5421_v38 }
 0x108   : > { %3599 = vmatprep.mubr.msk.bf16.mxu1 %vm314_vm1, %v5422_v45 }
 0x109   : > { %3742 = vmatmul.mubr.msk.bf16.vlgmr.msra.gmra.mrb[0].mxu0 %vm314_vm1, %v5411_v54 }
 0x10a   : > { %3745 = vmatprep.mubr.msk.bf16.mxu0 %vm314_vm1, %v5412_v63  ;;  %v5188_v63 = vld [vmem:[%s5301_s2] ss:$0 sm:$0xff] }
 0x10f   : > { %3600 = vmatmul.mubr.msk.bf16.gmra.mrb[28].mxu1 %vm314_vm1, %v5025_v39 }
 0x110   : > { %3621 = vmatprep.mubr.msk.bf16.mxu1 %vm314_vm1, %v4856_v34  ;;  %v3292_v34 = vrot.slane %v5032_v9, 9 }
 0x111   : > { %3746 = vmatmul.mubr.msk.bf16.gmra.mrb[4].mxu0 %vm314_vm1, %v5415_v41 }
 0x112   : > { %3749 = vmatprep.mubr.msk.bf16.mxu0 %vm314_vm1, %v5416_v27 }
 0x117   : > { %3622 = vmatmul.mubr.msk.bf16.vlgmr.msra.gmra.mrb[16].mxu1 %vm314_vm1, %v4864_v23 }
 0x118   : > { %3625 = vmatprep.mubr.msk.bf16.mxu1 %vm314_vm1, %v4900_v25 }
 0x119   : > { %3750 = vmatmul.mubr.msk.bf16.gmra.mrb[8].mxu0 %vm314_vm1, %v5419_v24 }
 0x11a   : > { %3753 = vmatprep.mubr.msk.bf16.mxu0 %vm314_vm1, %v4720_v43  ;;  %v2750_v43 = vsel %vm4468_vm7, %v3292_v34, %v2749_v53 }
 0x11f   : > { %3626 = vmatmul.mubr.msk.bf16.gmra.mrb[20].mxu1 %vm314_vm1, %v4903_v26 }
 0x120   : > { %3629 = vmatprep.mubr.msk.bf16.mxu1 %vm314_vm1, %v4940_v51 }
 0x121   : > { %3754 = vmatmul.mubr.msk.bf16.gmra.mrb[12].mxu0 %vm314_vm1, %v4724_v37 }
 0x122   : > { %3757 = vmatprep.mubr.msk.bf16.mxu0 %vm314_vm1, %v4729_v16  ;;  %v2751_v16 = vrot.slane %v2749_v53, 4 }
 0x124   : > { %v2753_v37 = vsel %vm4468_vm7, %v2751_v16, %v2752_v31 }
 0x127   : > { %3630 = vmatmul.mubr.msk.bf16.gmra.mrb[24].mxu1 %vm314_vm1, %v4946_v61 }
 0x128   : > { %3633 = vmatprep.mubr.msk.bf16.mxu1 %vm314_vm1, %v4964_v47 }
 0x129   : > { %3758 = vmatmul.mubr.msk.bf16.gmra.mrb[16].mxu0 %vm314_vm1, %v4757_v0  ;;  %v3294_v0 = vcombine.low %v2750_v43, %v2753_v37 }
 0x12a   : > { %3761 = vmatprep.mubr.msk.bf16.mxu0 %vm314_vm1, %v4759_v11 }
 0x12f   : > { %3634 = vmatmul.mubr.msk.bf16.gmra.mrb[28].mxu1 %vm314_vm1, %v4952_v21 }
 0x131   : > { %3762 = vmatmul.mubr.msk.bf16.gmra.mrb[20].mxu0 %vm314_vm1, %v4770_v4 }
 0x132   : > { %3765 = vmatprep.mubr.msk.bf16.mxu0 %vm314_vm1, %v4803_v5 }
 0x139   : > { %3766 = vmatmul.mubr.msk.bf16.gmra.mrb[24].mxu0 %vm314_vm1, %v4837_v55 }
 0x13a   : > { %3769 = vmatprep.mubr.msk.bf16.mxu0 %vm314_vm1, %v4924_v44 }
 0x141   : > { %3770 = vmatmul.mubr.msk.bf16.gmra.mrb[28].mxu0 %vm314_vm1, %v3294_v0 }
 0x1aa   : > { %v3573_v11 = vpop.f32.mrb[0].mxu1 }
 0x1ab   : > { %v1713_v4 = vpop.f32.mrb[1].mxu1  ;;  %v3775_v19 = vadd.f32 %v3573_v11, %v5188_v63 }
 0x1ac   : > { %v3574_v5 = vpop.f32.mrb[2].mxu1  ;;  %v3777_v2 = vadd.f32 %v5188_v63, %v1713_v4 }
 0x1ad   : > { %v1716_v23 = vpop.f32.mrb[3].mxu1  ;;  %v3779_v27 = vadd.f32 %v3574_v5, %v5188_v63 }
 0x1ae   : > { %v3781_v24 = vadd.f32 %v5188_v63, %v1716_v23 }
 0x1b2   : > { %v3577_v25 = vpop.f32.mrb[4].mxu1 }
 0x1b3   : > { %v1729_v26 = vpop.f32.mrb[5].mxu1  ;;  %v3783_v40 = vadd.f32 %v3577_v25, %v5188_v63 }
 0x1b4   : > { %v3578_v55 = vpop.f32.mrb[6].mxu1  ;;  %v3785_v20 = vadd.f32 %v5188_v63, %v1729_v26 }
 0x1b5   : > { %v1732_v51 = vpop.f32.mrb[7].mxu1  ;;  %v3787_v32 = vadd.f32 %v3578_v55, %v5188_v63 }
 0x1b6   : > { %v3789_v28 = vadd.f32 %v5188_v63, %v1732_v51 }
 0x1ba   : > { %v3581_v61 = vpop.f32.mrb[8].mxu1 }
 0x1bb   : > { %v1745_v44 = vpop.f32.mrb[9].mxu1  ;;  %v3791_v33 = vadd.f32 %v3581_v61, %v5188_v63 }
 0x1bc   : > { %v3582_v21 = vpop.f32.mrb[10].mxu1  ;;  %v3793_v48 = vadd.f32 %v5188_v63, %v1745_v44 }
 0x1bd   : > { %v1748_v47 = vpop.f32.mrb[11].mxu1  ;;  %v3795_v8 = vadd.f32 %v3582_v21, %v5188_v63 }
 0x1be   : > { %v3797_v16 = vadd.f32 %v5188_v63, %v1748_v47 }
 0x1c2   : > { %v5177_v14 = vpop.f32.mrb[12].mxu1 }
 0x1c3   : > { %v5179_v60 = vpop.f32.mrb[13].mxu1  ;;  %v3799_v44 = vadd.f32 %v5177_v14, %v5188_v63 }
 0x1c4   : > { %v5181_v1 = vpop.f32.mrb[14].mxu1  ;;  %v3801_v21 = vadd.f32 %v5188_v63, %v5179_v60 }
 0x1c5   : > { %v5183_v54 = vpop.f32.mrb[15].mxu1 }
 0x1dc   : > { %v3743_v41 = vpop.f32.mrb[0].mxu0 }
 0x1dd   : > { %v3776_v35 = vadd.f32 %v3775_v19, %v3743_v41  ;;  %v2799_v18 = vpop.f32.mrb[1].mxu0  ;;  %v3803_v19 = vadd.f32 %v5181_v1, %v5188_v63 }
 0x1de   : > { %v3778_v57 = vadd.f32 %v3777_v2, %v2799_v18  ;;  %v3744_v38 = vpop.f32.mrb[2].mxu0 }
 0x1df   : > { %v2960_v39 = vmax.f32 %v3776_v35, 0.0  ;;  %v3780_v45 = vadd.f32 %v3779_v27, %v3744_v38  ;;  %v2802_v9 = vpop.f32.mrb[3].mxu0  ;;  %v3805_v27 = vadd.f32 %v5188_v63, %v5183_v54 }
 0x1e0   : > { %v2958_v52 = vmax.f32 %v3778_v57, 0.0  ;;  %v3782_v13 = vadd.f32 %v3781_v24, %v2802_v9 }
 0x1e1   : > { %2993 = vst.msk [vmem:[%s5198_s18 + $0x10] sm:$0xff] %vm2990_vm8, %v2960_v39  ;;  %v2961_v29 = vmax.f32 %v3780_v45, 0.0 }
 0x1e2   : > { %2991 = vst.msk [vmem:[%s5198_s18] sm:$0xff] %vm2990_vm8, %v2958_v52  ;;  %v2959_v46 = vmax.f32 %v3782_v13, 0.0 }
 0x1e3   : > { %2994 = vst.msk [vmem:[%s5198_s18 + $0x18] sm:$0xff] %vm2990_vm8, %v2961_v29 }
 0x1e4   : > { %2992 = vst.msk [vmem:[%s5198_s18 + $0x8] sm:$0xff] %vm2990_vm8, %v2959_v46  ;;  %v3747_v6 = vpop.f32.mrb[4].mxu0 }
 0x1e5   : > { %v3784_v49 = vadd.f32 %v3783_v40, %v3747_v6  ;;  %v2815_v7 = vpop.f32.mrb[5].mxu0 }
 0x1e6   : > { %v3786_v15 = vadd.f32 %v3785_v20, %v2815_v7  ;;  %v3748_v10 = vpop.f32.mrb[6].mxu0 }
 0x1e7   : > { %v2964_v17 = vmax.f32 %v3784_v49, 0.0  ;;  %v3788_v22 = vadd.f32 %v3787_v32, %v3748_v10  ;;  %v2818_v3 = vpop.f32.mrb[7].mxu0 }
 0x1e8   : > { %v2962_v42 = vmax.f32 %v3786_v15, 0.0  ;;  %v3790_v12 = vadd.f32 %v3789_v28, %v2818_v3 }
 0x1e9   : > { %2997 = vst.msk [vmem:[%s5198_s18 + $0x30] sm:$0xff] %vm2990_vm8, %v2964_v17  ;;  %v2965_v59 = vmax.f32 %v3788_v22, 0.0 }
 0x1ea   : > { %v3623_v36 = vpop.f32.mrb[16].mxu1  ;;  %2995 = vst.msk [vmem:[%s5198_s18 + $0x20] sm:$0xff] %vm2990_vm8, %v2962_v42  ;;  %v2963_v50 = vmax.f32 %v3790_v12, 0.0 }
 0x1eb   : > { %v2005_v58 = vpop.f32.mrb[17].mxu1  ;;  %2998 = vst.msk [vmem:[%s5198_s18 + $0x38] sm:$0xff] %vm2990_vm8, %v2965_v59  ;;  %v3807_v54 = vadd.f32 %v3623_v36, %v5188_v63 }
 0x1ec   : > { %v3624_v30 = vpop.f32.mrb[18].mxu1  ;;  %2996 = vst.msk [vmem:[%s5198_s18 + $0x28] sm:$0xff] %vm2990_vm8, %v2963_v50  ;;  %v3751_v56 = vpop.f32.mrb[8].mxu0  ;;  %v3809_v29 = vadd.f32 %v5188_v63, %v2005_v58 }
 0x1ed   : > { %v2008_v62 = vpop.f32.mrb[19].mxu1  ;;  %v3792_v53 = vadd.f32 %v3791_v33, %v3751_v56  ;;  %v2831_v34 = vpop.f32.mrb[9].mxu0  ;;  %v3811_v40 = vadd.f32 %v3624_v30, %v5188_v63 }
 0x1ee   : > { %v3794_v31 = vadd.f32 %v3793_v48, %v2831_v34  ;;  %v3752_v43 = vpop.f32.mrb[10].mxu0  ;;  %v3813_v32 = vadd.f32 %v5188_v63, %v2008_v62 }
 0x1ef   : > { %v2968_v37 = vmax.f32 %v3792_v53, 0.0  ;;  %v3796_v0 = vadd.f32 %v3795_v8, %v3752_v43  ;;  %v2834_v11 = vpop.f32.mrb[11].mxu0 }
 0x1f0   : > { %v2966_v5 = vmax.f32 %v3794_v31, 0.0  ;;  %v3798_v23 = vadd.f32 %v3797_v16, %v2834_v11 }
 0x1f1   : > { %3001 = vst.msk [vmem:[%s5198_s18 + $0x50] sm:$0xff] %vm2990_vm8, %v2968_v37  ;;  %v2969_v26 = vmax.f32 %v3796_v0, 0.0 }
 0x1f2   : > { %v3627_v4 = vpop.f32.mrb[20].mxu1  ;;  %2999 = vst.msk [vmem:[%s5198_s18 + $0x40] sm:$0xff] %vm2990_vm8, %v2966_v5  ;;  %v2967_v51 = vmax.f32 %v3798_v23, 0.0 }
 0x1f3   : > { %v2021_v25 = vpop.f32.mrb[21].mxu1  ;;  %3002 = vst.msk [vmem:[%s5198_s18 + $0x58] sm:$0xff] %vm2990_vm8, %v2969_v26  ;;  %v3815_v30 = vadd.f32 %v3627_v4, %v5188_v63 }
 0x1f4   : > { %v3628_v55 = vpop.f32.mrb[22].mxu1  ;;  %3000 = vst.msk [vmem:[%s5198_s18 + $0x48] sm:$0xff] %vm2990_vm8, %v2967_v51  ;;  %v3755_v47 = vpop.f32.mrb[12].mxu0  ;;  %v3817_v50 = vadd.f32 %v5188_v63, %v2021_v25 }
 0x1f5   : > { %v2024_v61 = vpop.f32.mrb[23].mxu1  ;;  %v3800_v2 = vadd.f32 %v3799_v44, %v3755_v47  ;;  %v2847_v41 = vpop.f32.mrb[13].mxu0  ;;  %v3819_v33 = vadd.f32 %v3628_v55, %v5188_v63 }
 0x1f6   : > { %v3802_v35 = vadd.f32 %v3801_v21, %v2847_v41  ;;  %v3756_v14 = vpop.f32.mrb[14].mxu0  ;;  %v3821_v8 = vadd.f32 %v5188_v63, %v2024_v61 }
 0x1f7   : > { %v2972_v18 = vmax.f32 %v3800_v2, 0.0  ;;  %v3804_v24 = vadd.f32 %v3803_v19, %v3756_v14  ;;  %v2850_v60 = vpop.f32.mrb[15].mxu0 }
 0x1f8   : > { %v2970_v38 = vmax.f32 %v3802_v35, 0.0  ;;  %v3806_v39 = vadd.f32 %v3805_v27, %v2850_v60 }
 0x1f9   : > { %3005 = vst.msk [vmem:[%s5198_s18 + $0x70] sm:$0xff] %vm2990_vm8, %v2972_v18  ;;  %v2973_v1 = vmax.f32 %v3804_v24, 0.0 }
 0x1fa   : > { %v3631_v57 = vpop.f32.mrb[24].mxu1  ;;  %3003 = vst.msk [vmem:[%s5198_s18 + $0x60] sm:$0xff] %vm2990_vm8, %v2970_v38  ;;  %v2971_v52 = vmax.f32 %v3806_v39, 0.0 }
 0x1fb   : > { %v2037_v45 = vpop.f32.mrb[25].mxu1  ;;  %3006 = vst.msk [vmem:[%s5198_s18 + $0x78] sm:$0xff] %vm2990_vm8, %v2973_v1  ;;  %v3823_v5 = vadd.f32 %v3631_v57, %v5188_v63 }
 0x1fc   : > { %v3632_v9 = vpop.f32.mrb[26].mxu1  ;;  %3004 = vst.msk [vmem:[%s5198_s18 + $0x68] sm:$0xff] %vm2990_vm8, %v2971_v52  ;;  %v3759_v46 = vpop.f32.mrb[16].mxu0  ;;  %v3825_v23 = vadd.f32 %v5188_v63, %v2037_v45 }
 0x1fd   : > { %v2040_v13 = vpop.f32.mrb[27].mxu1  ;;  %v3808_v20 = vadd.f32 %v3807_v54, %v3759_v46  ;;  %v2863_v6 = vpop.f32.mrb[17].mxu0  ;;  %v3827_v26 = vadd.f32 %v3632_v9, %v5188_v63 }
 0x1fe   : > { %v3810_v49 = vadd.f32 %v3809_v29, %v2863_v6  ;;  %v3760_v7 = vpop.f32.mrb[18].mxu0  ;;  %v3829_v61 = vadd.f32 %v5188_v63, %v2040_v13 }
 0x1ff   : > { %v2976_v28 = vmax.f32 %v3808_v20, 0.0  ;;  %v3812_v15 = vadd.f32 %v3811_v40, %v3760_v7  ;;  %v2866_v10 = vpop.f32.mrb[19].mxu0 }
 0x200   : > { %v2974_v22 = vmax.f32 %v3810_v49, 0.0  ;;  %v3814_v3 = vadd.f32 %v3813_v32, %v2866_v10 }
 0x201   : > { %3009 = vst.msk [vmem:[%s5198_s18 + $0x90] sm:$0xff] %vm2990_vm8, %v2976_v28  ;;  %v2977_v42 = vmax.f32 %v3812_v15, 0.0 }
 0x202   : > { %v3635_v17 = vpop.f32.mrb[28].mxu1  ;;  %3007 = vst.msk [vmem:[%s5198_s18 + $0x80] sm:$0xff] %vm2990_vm8, %v2974_v22  ;;  %v2975_v58 = vmax.f32 %v3814_v3, 0.0 }
 0x203   : > { %v2053_v36 = vpop.f32.mrb[29].mxu1  ;;  %3010 = vst.msk [vmem:[%s5198_s18 + $0x98] sm:$0xff] %vm2990_vm8, %v2977_v42  ;;  %v3831_v18 = vadd.f32 %v3635_v17, %v5188_v63 }
 0x204   : > { %v3636_v12 = vpop.f32.mrb[30].mxu1  ;;  %3008 = vst.msk [vmem:[%s5198_s18 + $0x88] sm:$0xff] %vm2990_vm8, %v2975_v58  ;;  %v3763_v62 = vpop.f32.mrb[20].mxu0  ;;  %v3833_v24 = vadd.f32 %v5188_v63, %v2053_v36 }
 0x205   : > { %v2056_v59 = vpop.f32.mrb[31].mxu1  ;;  %v3816_v48 = vadd.f32 %v3815_v30, %v3763_v62  ;;  %v2879_v56 = vpop.f32.mrb[21].mxu0  ;;  %v3835_v57 = vadd.f32 %v3636_v12, %v5188_v63 }
 0x206   : > { %v3818_v53 = vadd.f32 %v3817_v50, %v2879_v56  ;;  %v3764_v34 = vpop.f32.mrb[22].mxu0  ;;  %v3837_v45 = vadd.f32 %v5188_v63, %v2056_v59 }
 0x207   : > { %v2980_v16 = vmax.f32 %v3816_v48, 0.0  ;;  %v3820_v31 = vadd.f32 %v3819_v33, %v3764_v34  ;;  %v2882_v43 = vpop.f32.mrb[23].mxu0 }
 0x208   : > { %v2978_v37 = vmax.f32 %v3818_v53, 0.0  ;;  %v3822_v0 = vadd.f32 %v3821_v8, %v2882_v43 }
 0x209   : > { %3013 = vst.msk [vmem:[%s5198_s18 + $0xb0] sm:$0xff] %vm2990_vm8, %v2980_v16  ;;  %v2981_v11 = vmax.f32 %v3820_v31, 0.0 }
 0x20a   : > { %3011 = vst.msk [vmem:[%s5198_s18 + $0xa0] sm:$0xff] %vm2990_vm8, %v2978_v37  ;;  %v2979_v4 = vmax.f32 %v3822_v0, 0.0 }
 0x20b   : > { %3014 = vst.msk [vmem:[%s5198_s18 + $0xb8] sm:$0xff] %vm2990_vm8, %v2981_v11 }
 0x20c   : > { %3012 = vst.msk [vmem:[%s5198_s18 + $0xa8] sm:$0xff] %vm2990_vm8, %v2979_v4  ;;  %v3767_v25 = vpop.f32.mrb[24].mxu0 }
 0x20d   : > { %v3824_v55 = vadd.f32 %v3823_v5, %v3767_v25  ;;  %v2895_v51 = vpop.f32.mrb[25].mxu0 }
 0x20e   : > { %v3826_v44 = vadd.f32 %v3825_v23, %v2895_v51  ;;  %v3768_v21 = vpop.f32.mrb[26].mxu0 }
 0x20f   : > { %v2984_v47 = vmax.f32 %v3824_v55, 0.0  ;;  %v3828_v19 = vadd.f32 %v3827_v26, %v3768_v21  ;;  %v2898_v2 = vpop.f32.mrb[27].mxu0 }
 0x210   : > { %v2982_v41 = vmax.f32 %v3826_v44, 0.0  ;;  %v3830_v27 = vadd.f32 %v3829_v61, %v2898_v2 }
 0x211   : > { %3017 = vst.msk [vmem:[%s5198_s18 + $0xd0] sm:$0xff] %vm2990_vm8, %v2984_v47  ;;  %v2985_v35 = vmax.f32 %v3828_v19, 0.0 }
 0x212   : > { %3015 = vst.msk [vmem:[%s5198_s18 + $0xc0] sm:$0xff] %vm2990_vm8, %v2982_v41  ;;  %v2983_v14 = vmax.f32 %v3830_v27, 0.0 }
 0x213   : > { %3018 = vst.msk [vmem:[%s5198_s18 + $0xd8] sm:$0xff] %vm2990_vm8, %v2985_v35 }
 0x214   : > { %3016 = vst.msk [vmem:[%s5198_s18 + $0xc8] sm:$0xff] %vm2990_vm8, %v2983_v14  ;;  %v3771_v60 = vpop.f32.mrb[28].mxu0 }
 0x215   : > { %v3832_v38 = vadd.f32 %v3831_v18, %v3771_v60  ;;  %v2911_v39 = vpop.f32.mrb[29].mxu0 }
 0x216   : > { %v3834_v1 = vadd.f32 %v3833_v24, %v2911_v39  ;;  %v3772_v9 = vpop.f32.mrb[30].mxu0 }
 0x217   : > { %v2988_v52 = vmax.f32 %v3832_v38, 0.0  ;;  %v3836_v13 = vadd.f32 %v3835_v57, %v3772_v9  ;;  %v2914_v54 = vpop.f32.mrb[31].mxu0 }
 0x218   : > { %v2986_v29 = vmax.f32 %v3834_v1, 0.0  ;;  %v3838_v46 = vadd.f32 %v3837_v45, %v2914_v54 }
 0x219   : > { %3021 = vst.msk [vmem:[%s5198_s18 + $0xf0] sm:$0xff] %vm2990_vm8, %v2988_v52  ;;  %v2989_v40 = vmax.f32 %v3836_v13, 0.0 }
 0x21a   : > { %3019 = vst.msk [vmem:[%s5198_s18 + $0xe0] sm:$0xff] %vm2990_vm8, %v2986_v29  ;;  %v2987_v20 = vmax.f32 %v3838_v46, 0.0 }
 0x21b   : > { %3022 = vst.msk [vmem:[%s5198_s18 + $0xf8] sm:$0xff] %vm2990_vm8, %v2989_v40 }
 0x21c   : > { %3020 = vst.msk [vmem:[%s5198_s18 + $0xe8] sm:$0xff] %vm2990_vm8, %v2987_v20 }
 0x21d PF: > { %s13_s12 = sadd.s32 1, %s4107_s12  }
 0x21e   : > { %p10_p4 = scmp.ge.s32.totalorder %s13_s12, 4  }
 0x220   :  { %12 = sbr.rel (!%p10_p4) target bundleno = 1 (0x1), region = 70 }

</bundles_post_ra>
